<compile_context>
chip_gen: v6e
topology: v6e:2x2x1
jax: 0.10.0
libtpu: 0.0.40
codegen_flags: <defaults>
</compile_context>

<pallas_src>
import functools

import jax
import jax.numpy as jnp
from jax.experimental import pallas as pl
from jax.experimental.pallas import tpu as pltpu

# Layer widths: 512 -> 256 -> 128 -> 64 -> 128 -> 256 -> 512
DIMS = (512, 256, 128, 64, 128, 256, 512)


def _round_up(n, m):
    return ((n + m - 1) // m) * m


def _tpu_generation():
    """Best-effort TPU generation (5, 6, 7, ...) from device_kind; None if unknown."""
    try:
        kind = jax.devices()[0].device_kind.lower().replace(" ", "")
    except Exception:
        return None
    for g in (7, 6, 5, 4, 3, 2):
        if f"v{g}" in kind or f"tpu{g}" in kind:
            return g
    return None


# --------------------------------------------------------------------------- #
# Kernel
# --------------------------------------------------------------------------- #
def _ae_kernel(x_ref,
               w1, b1, w2, b2, w3, b3,    # encoder
               w4, b4, w5, b5, w6, b6,    # decoder
               o_ref, *, act_dtype):

    def linear(h_bf16, w_ref, b_ref):
        # bf16 matmul inputs, f32 accumulation on the MXU; bias add in f32.
        y = jnp.dot(h_bf16, w_ref[...], preferred_element_type=jnp.float32)
        return y + b_ref[...]

    def tanh_act(y_f32):
        # v6e/v7x: tanh in bf16 (2 elems/lane on the single EUP, fewer casts);
        # v5e: tanh stays f32 (no bf16 EUP), result cast to bf16 for next MXU pass.
        return jnp.tanh(y_f32.astype(act_dtype)).astype(jnp.bfloat16)

    h = x_ref[...]                      # bf16 activations straight from HBM

    # encoder: Linear(512,256)+Tanh, Linear(256,128)+Tanh, Linear(128,64)+Tanh
    h = tanh_act(linear(h, w1, b1))
    h = tanh_act(linear(h, w2, b2))
    h = tanh_act(linear(h, w3, b3))

    # decoder: Linear(64,128)+Tanh, Linear(128,256)+Tanh, Linear(256,512)+Sigmoid
    h = tanh_act(linear(h, w4, b4))
    h = tanh_act(linear(h, w5, b5))
    z = linear(h, w6, b6)

    # sigmoid(x) == 0.5 * tanh(x / 2) + 0.5  -> single EUP op, exact identity.
    s = 0.5 * jnp.tanh(0.5 * z.astype(act_dtype)) + 0.5
    o_ref[...] = s.astype(o_ref.dtype)


# --------------------------------------------------------------------------- #
# pallas_call wrapper
# --------------------------------------------------------------------------- #
@functools.partial(jax.jit,
                   static_argnames=("tm", "bf16_act", "out_dtype", "buffered_params"))
def _ae_pallas(x, flat_params, *, tm, bf16_act, out_dtype, buffered_params):
    Bp = x.shape[0]
    act_dtype = jnp.bfloat16 if bf16_act else jnp.float32

    x_spec = pl.BlockSpec((tm, DIMS[0]), lambda i: (i, 0))
    o_spec = pl.BlockSpec((tm, DIMS[-1]), lambda i: (i, 0))

    # Every weight/bias is a single full-extent block with a constant index_map,
    # so it is DMA'd once and stays VMEM-resident across all grid steps.
    if buffered_params:
        # Buffered(1): no double-buffering for data that never changes.
        param_specs = [pl.BlockSpec(p.shape, lambda i: (0, 0),
                                    pipeline_mode=pl.Buffered(1))
                       for p in flat_params]
    else:
        param_specs = [pl.BlockSpec(p.shape, lambda i: (0, 0))
                       for p in flat_params]

    weight_bytes = sum(p.size * p.dtype.itemsize for p in flat_params)
    cost = pl.CostEstimate(
        flops=2 * Bp * sum(DIMS[i] * DIMS[i + 1] for i in range(6)),
        transcendentals=Bp * sum(DIMS[1:]),
        bytes_accessed=Bp * (DIMS[0] * x.dtype.itemsize
                             + DIMS[-1] * jnp.dtype(out_dtype).itemsize)
                       + weight_bytes,
    )

    return pl.pallas_call(
        functools.partial(_ae_kernel, act_dtype=act_dtype),
        out_shape=jax.ShapeDtypeStruct((Bp, DIMS[-1]), out_dtype),
        grid_spec=pltpu.PrefetchScalarGridSpec(
            num_scalar_prefetch=0,
            grid=(Bp // tm,),
            in_specs=[x_spec] + param_specs,
            out_specs=o_spec,
        ),
        compiler_params=pltpu.CompilerParams(
            dimension_semantics=("parallel",),
            vmem_limit_bytes=48 * 1024 * 1024,
        ),
        cost_estimate=cost,
    )(x, *flat_params)


_BUFFERED_PARAMS_OK = None  # decided on first call; cached afterwards


def _run(x, flat_params, **static):
    """Call the kernel, preferring Buffered(1) param specs with a safe fallback."""
    global _BUFFERED_PARAMS_OK
    if _BUFFERED_PARAMS_OK is None:
        try:
            out = _ae_pallas(x, flat_params, buffered_params=True, **static)
            jax.block_until_ready(out)
            _BUFFERED_PARAMS_OK = True
            return out
        except Exception:
            _BUFFERED_PARAMS_OK = False
    return _ae_pallas(x, flat_params, buffered_params=_BUFFERED_PARAMS_OK, **static)


def auto_encoder_forward(x, params, *, tm=None, out_dtype=jnp.bfloat16):
    """x: (B, 512); params: list of 6 (W:(in,out), b:(1,out)) pairs.

    Any batch size B is accepted (padded to a sublane-aligned tile multiple).
    Output dtype defaults to bf16 (downstream sees ~3 significant digits on
    values in [0,1]); pass out_dtype=jnp.float32 if exact-width output matters.
    """
    B, f_in = x.shape
    assert f_in == DIMS[0]

    gen = _tpu_generation()
    bf16_act = gen is not None and gen >= 6        # bf16 EUP path on v6e/v7x only
    if tm is None:
        tm = 1024 if gen == 7 else 2048            # v7x: cap tile (64 MiB VMEM/TC)
    want_two_steps = (gen == 7) and B >= 16        # keep both v7x TensorCores busy

    # Tile selection: minimize padding waste while honoring the requested max
    # tile size; tiles rounded up to a sublane multiple of 8.
    n_tiles = max(1, -(-B // tm))
    if want_two_steps:
        n_tiles = max(n_tiles, 2)
    tm_eff = _round_up(-(-B // n_tiles), 8)
    Bp = tm_eff * n_tiles
    if Bp != B:
        x = jnp.pad(x, ((0, Bp - B), (0, 0)))

    # Weights shipped as bf16 (MXU-native, half the weight DMA); biases f32.
    flat_params = []
    for (w, b) in params:
        flat_params.append(w.astype(jnp.bfloat16))
        flat_params.append(b.astype(jnp.float32))
    flat_params = tuple(flat_params)

    x = x.astype(jnp.bfloat16)                     # bf16 activation input

    out = _run(x, flat_params, tm=tm_eff, bf16_act=bf16_act, out_dtype=out_dtype)
    return out[:B]


# --------------------------------------------------------------------------- #
# Reference + params
# --------------------------------------------------------------------------- #
def init_params(key):
    """Deterministic init of 6 Linear layers; W stored as (in, out)."""
    params = []
    for li in range(6):
        d_in, d_out = DIMS[li], DIMS[li + 1]
        key, kw, kb = jax.random.split(key, 3)
        bound = 1.0 / jnp.sqrt(d_in)  # matches PyTorch nn.Linear init scale
        w = jax.random.uniform(kw, (d_in, d_out), jnp.float32, -bound, bound)
        b = jax.random.uniform(kb, (1, d_out), jnp.float32, -bound, bound)
        params.append((w, b))
    return params


def reference_forward(x, params):
    """Pure-JAX f32 reference for numerical check."""
    h = x
    for li, (w, b) in enumerate(params):
        h = h @ w + b
        h = jax.nn.sigmoid(h) if li == 5 else jnp.tanh(h)
    return h


if __name__ == "__main__":
    key = jax.random.PRNGKey(0)
    key, kx1, kx2 = jax.random.split(key, 3)
    params = init_params(key)

    # Small smoke test.
    B1 = 8
    x1 = jax.random.normal(kx1, (B1, DIMS[0]), jnp.float32)
    out1 = jax.block_until_ready(auto_encoder_forward(x1, params))
    ref1 = reference_forward(x1, params)
    assert out1.shape == (B1, DIMS[-1])
    # bf16 weights/activations + bf16 output vs f32 reference -> loose tolerance.
    assert jnp.allclose(out1.astype(jnp.float32), ref1, atol=3e-2, rtol=3e-2), \
        "mismatch vs reference (B=8)"

    # Awkward batch size: exercises padding-minimizing tile selection.
    B2 = 300
    x2 = jax.random.normal(kx2, (B2, DIMS[0]), jnp.float32)
    out2 = jax.block_until_ready(auto_encoder_forward(x2, params))
    ref2 = reference_forward(x2, params)
    assert out2.shape == (B2, DIMS[-1])
    assert jnp.allclose(out2.astype(jnp.float32), ref2, atol=3e-2, rtol=3e-2), \
        "mismatch vs reference (B=300)"

    print("KERNEL_OK")
</pallas_src>

<mosaic_0001>
module attributes {stable_mosaic.version = 11 : i64} {
  func.func @_ae_kernel(%arg0: i32, %arg1: memref<8x512xbf16, #tpu.memory_space<vmem>>, %arg2: memref<512x256xbf16, #tpu.memory_space<vmem>>, %arg3: memref<1x256xf32, #tpu.memory_space<vmem>>, %arg4: memref<256x128xbf16, #tpu.memory_space<vmem>>, %arg5: memref<1x128xf32, #tpu.memory_space<vmem>>, %arg6: memref<128x64xbf16, #tpu.memory_space<vmem>>, %arg7: memref<1x64xf32, #tpu.memory_space<vmem>>, %arg8: memref<64x128xbf16, #tpu.memory_space<vmem>>, %arg9: memref<1x128xf32, #tpu.memory_space<vmem>>, %arg10: memref<128x256xbf16, #tpu.memory_space<vmem>>, %arg11: memref<1x256xf32, #tpu.memory_space<vmem>>, %arg12: memref<256x512xbf16, #tpu.memory_space<vmem>>, %arg13: memref<1x512xf32, #tpu.memory_space<vmem>>, %arg14: memref<8x512xbf16, #tpu.memory_space<vmem>>) attributes {dimension_semantics = [#tpu.dimension_semantics<parallel>], iteration_bounds = array<i64: 1>, scalar_prefetch = 0 : i64, scratch_operands = 0 : i64, tpu.core_type = #tpu.core_type<tc>, window_params = [{transform_indices = @transform_0, window_bounds = array<i64: 8, 512>}, {pipeline_mode = #tpu.pipeline_mode<synchronous>, transform_indices = @transform_1, window_bounds = array<i64: 512, 256>}, {pipeline_mode = #tpu.pipeline_mode<synchronous>, transform_indices = @transform_2, window_bounds = array<i64: 1, 256>}, {pipeline_mode = #tpu.pipeline_mode<synchronous>, transform_indices = @transform_3, window_bounds = array<i64: 256, 128>}, {pipeline_mode = #tpu.pipeline_mode<synchronous>, transform_indices = @transform_4, window_bounds = array<i64: 1, 128>}, {pipeline_mode = #tpu.pipeline_mode<synchronous>, transform_indices = @transform_5, window_bounds = array<i64: 128, 64>}, {pipeline_mode = #tpu.pipeline_mode<synchronous>, transform_indices = @transform_6, window_bounds = array<i64: 1, 64>}, {pipeline_mode = #tpu.pipeline_mode<synchronous>, transform_indices = @transform_7, window_bounds = array<i64: 64, 128>}, {pipeline_mode = #tpu.pipeline_mode<synchronous>, transform_indices = @transform_8, window_bounds = array<i64: 1, 128>}, {pipeline_mode = #tpu.pipeline_mode<synchronous>, transform_indices = @transform_9, window_bounds = array<i64: 128, 256>}, {pipeline_mode = #tpu.pipeline_mode<synchronous>, transform_indices = @transform_10, window_bounds = array<i64: 1, 256>}, {pipeline_mode = #tpu.pipeline_mode<synchronous>, transform_indices = @transform_11, window_bounds = array<i64: 256, 512>}, {pipeline_mode = #tpu.pipeline_mode<synchronous>, transform_indices = @transform_12, window_bounds = array<i64: 1, 512>}, {transform_indices = @transform_13, window_bounds = array<i64: 8, 512>}]} {
    %c0 = arith.constant 0 : index
    %c0_0 = arith.constant 0 : index
    %0 = vector.load %arg1[%c0, %c0_0] : memref<8x512xbf16, #tpu.memory_space<vmem>>, vector<8x512xbf16>
    %c0_1 = arith.constant 0 : index
    %c0_2 = arith.constant 0 : index
    %1 = vector.load %arg2[%c0_1, %c0_2] : memref<512x256xbf16, #tpu.memory_space<vmem>>, vector<512x256xbf16>
    %cst = arith.constant dense<0.000000e+00> : vector<8x256xf32>
    %2 = tpu.matmul %0, %1, %cst {dimension_numbers = #tpu.dot_dimension_numbers<[1], [0], [0], [1], [0, 0, 1, 1], [], []>} : vector<8x512xbf16>, vector<512x256xbf16>, vector<8x256xf32> -> vector<8x256xf32>
    %c0_3 = arith.constant 0 : index
    %c0_4 = arith.constant 0 : index
    %3 = vector.load %arg3[%c0_3, %c0_4] : memref<1x256xf32, #tpu.memory_space<vmem>>, vector<1x256xf32>
    %4 = vector.broadcast %3 : vector<1x256xf32> to vector<8x256xf32>
    %5 = arith.addf %2, %4 : vector<8x256xf32>
    %6 = math.tanh %5 : vector<8x256xf32>
    %7 = arith.truncf %6 : vector<8x256xf32> to vector<8x256xbf16>
    %c0_5 = arith.constant 0 : index
    %c0_6 = arith.constant 0 : index
    %8 = vector.load %arg4[%c0_5, %c0_6] : memref<256x128xbf16, #tpu.memory_space<vmem>>, vector<256x128xbf16>
    %cst_7 = arith.constant dense<0.000000e+00> : vector<8x128xf32>
    %9 = tpu.matmul %7, %8, %cst_7 {dimension_numbers = #tpu.dot_dimension_numbers<[1], [0], [0], [1], [0, 0, 1, 1], [], []>} : vector<8x256xbf16>, vector<256x128xbf16>, vector<8x128xf32> -> vector<8x128xf32>
    %c0_8 = arith.constant 0 : index
    %c0_9 = arith.constant 0 : index
    %10 = vector.load %arg5[%c0_8, %c0_9] : memref<1x128xf32, #tpu.memory_space<vmem>>, vector<1x128xf32>
    %11 = vector.broadcast %10 : vector<1x128xf32> to vector<8x128xf32>
    %12 = arith.addf %9, %11 : vector<8x128xf32>
    %13 = math.tanh %12 : vector<8x128xf32>
    %14 = arith.truncf %13 : vector<8x128xf32> to vector<8x128xbf16>
    %c0_10 = arith.constant 0 : index
    %c0_11 = arith.constant 0 : index
    %15 = vector.load %arg6[%c0_10, %c0_11] : memref<128x64xbf16, #tpu.memory_space<vmem>>, vector<128x64xbf16>
    %cst_12 = arith.constant dense<0.000000e+00> : vector<8x64xf32>
    %16 = tpu.matmul %14, %15, %cst_12 {dimension_numbers = #tpu.dot_dimension_numbers<[1], [0], [0], [1], [0, 0, 1, 1], [], []>} : vector<8x128xbf16>, vector<128x64xbf16>, vector<8x64xf32> -> vector<8x64xf32>
    %c0_13 = arith.constant 0 : index
    %c0_14 = arith.constant 0 : index
    %17 = vector.load %arg7[%c0_13, %c0_14] : memref<1x64xf32, #tpu.memory_space<vmem>>, vector<1x64xf32>
    %18 = vector.broadcast %17 : vector<1x64xf32> to vector<8x64xf32>
    %19 = arith.addf %16, %18 : vector<8x64xf32>
    %20 = math.tanh %19 : vector<8x64xf32>
    %21 = arith.truncf %20 : vector<8x64xf32> to vector<8x64xbf16>
    %c0_15 = arith.constant 0 : index
    %c0_16 = arith.constant 0 : index
    %22 = vector.load %arg8[%c0_15, %c0_16] : memref<64x128xbf16, #tpu.memory_space<vmem>>, vector<64x128xbf16>
    %cst_17 = arith.constant dense<0.000000e+00> : vector<8x128xf32>
    %23 = tpu.matmul %21, %22, %cst_17 {dimension_numbers = #tpu.dot_dimension_numbers<[1], [0], [0], [1], [0, 0, 1, 1], [], []>} : vector<8x64xbf16>, vector<64x128xbf16>, vector<8x128xf32> -> vector<8x128xf32>
    %c0_18 = arith.constant 0 : index
    %c0_19 = arith.constant 0 : index
    %24 = vector.load %arg9[%c0_18, %c0_19] : memref<1x128xf32, #tpu.memory_space<vmem>>, vector<1x128xf32>
    %25 = vector.broadcast %24 : vector<1x128xf32> to vector<8x128xf32>
    %26 = arith.addf %23, %25 : vector<8x128xf32>
    %27 = math.tanh %26 : vector<8x128xf32>
    %28 = arith.truncf %27 : vector<8x128xf32> to vector<8x128xbf16>
    %c0_20 = arith.constant 0 : index
    %c0_21 = arith.constant 0 : index
    %29 = vector.load %arg10[%c0_20, %c0_21] : memref<128x256xbf16, #tpu.memory_space<vmem>>, vector<128x256xbf16>
    %cst_22 = arith.constant dense<0.000000e+00> : vector<8x256xf32>
    %30 = tpu.matmul %28, %29, %cst_22 {dimension_numbers = #tpu.dot_dimension_numbers<[1], [0], [0], [1], [0, 0, 1, 1], [], []>} : vector<8x128xbf16>, vector<128x256xbf16>, vector<8x256xf32> -> vector<8x256xf32>
    %c0_23 = arith.constant 0 : index
    %c0_24 = arith.constant 0 : index
    %31 = vector.load %arg11[%c0_23, %c0_24] : memref<1x256xf32, #tpu.memory_space<vmem>>, vector<1x256xf32>
    %32 = vector.broadcast %31 : vector<1x256xf32> to vector<8x256xf32>
    %33 = arith.addf %30, %32 : vector<8x256xf32>
    %34 = math.tanh %33 : vector<8x256xf32>
    %35 = arith.truncf %34 : vector<8x256xf32> to vector<8x256xbf16>
    %c0_25 = arith.constant 0 : index
    %c0_26 = arith.constant 0 : index
    %36 = vector.load %arg12[%c0_25, %c0_26] : memref<256x512xbf16, #tpu.memory_space<vmem>>, vector<256x512xbf16>
    %cst_27 = arith.constant dense<0.000000e+00> : vector<8x512xf32>
    %37 = tpu.matmul %35, %36, %cst_27 {dimension_numbers = #tpu.dot_dimension_numbers<[1], [0], [0], [1], [0, 0, 1, 1], [], []>} : vector<8x256xbf16>, vector<256x512xbf16>, vector<8x512xf32> -> vector<8x512xf32>
    %c0_28 = arith.constant 0 : index
    %c0_29 = arith.constant 0 : index
    %38 = vector.load %arg13[%c0_28, %c0_29] : memref<1x512xf32, #tpu.memory_space<vmem>>, vector<1x512xf32>
    %39 = vector.broadcast %38 : vector<1x512xf32> to vector<8x512xf32>
    %40 = arith.addf %37, %39 : vector<8x512xf32>
    %cst_30 = arith.constant 5.000000e-01 : f32
    %41 = vector.broadcast %cst_30 : f32 to vector<8x512xf32>
    %42 = arith.mulf %41, %40 : vector<8x512xf32>
    %43 = math.tanh %42 : vector<8x512xf32>
    %cst_31 = arith.constant 5.000000e-01 : f32
    %44 = vector.broadcast %cst_31 : f32 to vector<8x512xf32>
    %45 = arith.mulf %44, %43 : vector<8x512xf32>
    %cst_32 = arith.constant 5.000000e-01 : f32
    %46 = vector.broadcast %cst_32 : f32 to vector<8x512xf32>
    %47 = arith.addf %45, %46 : vector<8x512xf32>
    %48 = arith.truncf %47 : vector<8x512xf32> to vector<8x512xbf16>
    %c0_33 = arith.constant 0 : index
    %c0_34 = arith.constant 0 : index
    %49 = vector.load %arg14[%c0_33, %c0_34] : memref<8x512xbf16, #tpu.memory_space<vmem>>, vector<8x512xbf16>
    tpu.vector_store %arg14[%c0_33, %c0_34], %48 {strides = array<i32>} : memref<8x512xbf16, #tpu.memory_space<vmem>>, vector<8x512xbf16>,
    return
  }
  func.func @transform_0(%arg0: i32) -> (i32, i32) {
    %c0_i32 = arith.constant 0 : i32
    %c0_i32_0 = arith.constant 0 : i32
    return %arg0, %c0_i32 : i32, i32
  }
  func.func @transform_1(%arg0: i32) -> (i32, i32) {
    %c0_i32 = arith.constant 0 : i32
    %c0_i32_0 = arith.constant 0 : i32
    %c0_i32_1 = arith.constant 0 : i32
    return %c0_i32, %c0_i32_0 : i32, i32
  }
  func.func @transform_2(%arg0: i32) -> (i32, i32) {
    %c0_i32 = arith.constant 0 : i32
    %c0_i32_0 = arith.constant 0 : i32
    %c0_i32_1 = arith.constant 0 : i32
    return %c0_i32, %c0_i32_0 : i32, i32
  }
  func.func @transform_3(%arg0: i32) -> (i32, i32) {
    %c0_i32 = arith.constant 0 : i32
    %c0_i32_0 = arith.constant 0 : i32
    %c0_i32_1 = arith.constant 0 : i32
    return %c0_i32, %c0_i32_0 : i32, i32
  }
  func.func @transform_4(%arg0: i32) -> (i32, i32) {
    %c0_i32 = arith.constant 0 : i32
    %c0_i32_0 = arith.constant 0 : i32
    %c0_i32_1 = arith.constant 0 : i32
    return %c0_i32, %c0_i32_0 : i32, i32
  }
  func.func @transform_5(%arg0: i32) -> (i32, i32) {
    %c0_i32 = arith.constant 0 : i32
    %c0_i32_0 = arith.constant 0 : i32
    %c0_i32_1 = arith.constant 0 : i32
    return %c0_i32, %c0_i32_0 : i32, i32
  }
  func.func @transform_6(%arg0: i32) -> (i32, i32) {
    %c0_i32 = arith.constant 0 : i32
    %c0_i32_0 = arith.constant 0 : i32
    %c0_i32_1 = arith.constant 0 : i32
    return %c0_i32, %c0_i32_0 : i32, i32
  }
  func.func @transform_7(%arg0: i32) -> (i32, i32) {
    %c0_i32 = arith.constant 0 : i32
    %c0_i32_0 = arith.constant 0 : i32
    %c0_i32_1 = arith.constant 0 : i32
    return %c0_i32, %c0_i32_0 : i32, i32
  }
  func.func @transform_8(%arg0: i32) -> (i32, i32) {
    %c0_i32 = arith.constant 0 : i32
    %c0_i32_0 = arith.constant 0 : i32
    %c0_i32_1 = arith.constant 0 : i32
    return %c0_i32, %c0_i32_0 : i32, i32
  }
  func.func @transform_9(%arg0: i32) -> (i32, i32) {
    %c0_i32 = arith.constant 0 : i32
    %c0_i32_0 = arith.constant 0 : i32
    %c0_i32_1 = arith.constant 0 : i32
    return %c0_i32, %c0_i32_0 : i32, i32
  }
  func.func @transform_10(%arg0: i32) -> (i32, i32) {
    %c0_i32 = arith.constant 0 : i32
    %c0_i32_0 = arith.constant 0 : i32
    %c0_i32_1 = arith.constant 0 : i32
    return %c0_i32, %c0_i32_0 : i32, i32
  }
  func.func @transform_11(%arg0: i32) -> (i32, i32) {
    %c0_i32 = arith.constant 0 : i32
    %c0_i32_0 = arith.constant 0 : i32
    %c0_i32_1 = arith.constant 0 : i32
    return %c0_i32, %c0_i32_0 : i32, i32
  }
  func.func @transform_12(%arg0: i32) -> (i32, i32) {
    %c0_i32 = arith.constant 0 : i32
    %c0_i32_0 = arith.constant 0 : i32
    %c0_i32_1 = arith.constant 0 : i32
    return %c0_i32, %c0_i32_0 : i32, i32
  }
  func.func @transform_13(%arg0: i32) -> (i32, i32) {
    %c0_i32 = arith.constant 0 : i32
    %c0_i32_0 = arith.constant 0 : i32
    return %arg0, %c0_i32 : i32, i32
  }
}

module attributes {stable_mosaic.version = 11 : i64} {
  func.func @_ae_kernel(%arg0: i32, %arg1: memref<8x512xbf16, #tpu.memory_space<vmem>>, %arg2: memref<512x256xbf16, #tpu.memory_space<vmem>>, %arg3: memref<1x256xf32, #tpu.memory_space<vmem>>, %arg4: memref<256x128xbf16, #tpu.memory_space<vmem>>, %arg5: memref<1x128xf32, #tpu.memory_space<vmem>>, %arg6: memref<128x64xbf16, #tpu.memory_space<vmem>>, %arg7: memref<1x64xf32, #tpu.memory_space<vmem>>, %arg8: memref<64x128xbf16, #tpu.memory_space<vmem>>, %arg9: memref<1x128xf32, #tpu.memory_space<vmem>>, %arg10: memref<128x256xbf16, #tpu.memory_space<vmem>>, %arg11: memref<1x256xf32, #tpu.memory_space<vmem>>, %arg12: memref<256x512xbf16, #tpu.memory_space<vmem>>, %arg13: memref<1x512xf32, #tpu.memory_space<vmem>>, %arg14: memref<8x512xbf16, #tpu.memory_space<vmem>>) attributes {dimension_semantics = [#tpu.dimension_semantics<parallel>], iteration_bounds = array<i64: 1>, scalar_prefetch = 0 : i64, scratch_operands = 0 : i64, tpu.core_type = #tpu.core_type<tc>, window_params = [{transform_indices = @transform_0, window_bounds = array<i64: 8, 512>}, {pipeline_mode = #tpu.pipeline_mode<synchronous>, transform_indices = @transform_1, window_bounds = array<i64: 512, 256>}, {pipeline_mode = #tpu.pipeline_mode<synchronous>, transform_indices = @transform_2, window_bounds = array<i64: 1, 256>}, {pipeline_mode = #tpu.pipeline_mode<synchronous>, transform_indices = @transform_3, window_bounds = array<i64: 256, 128>}, {pipeline_mode = #tpu.pipeline_mode<synchronous>, transform_indices = @transform_4, window_bounds = array<i64: 1, 128>}, {pipeline_mode = #tpu.pipeline_mode<synchronous>, transform_indices = @transform_5, window_bounds = array<i64: 128, 64>}, {pipeline_mode = #tpu.pipeline_mode<synchronous>, transform_indices = @transform_6, window_bounds = array<i64: 1, 64>}, {pipeline_mode = #tpu.pipeline_mode<synchronous>, transform_indices = @transform_7, window_bounds = array<i64: 64, 128>}, {pipeline_mode = #tpu.pipeline_mode<synchronous>, transform_indices = @transform_8, window_bounds = array<i64: 1, 128>}, {pipeline_mode = #tpu.pipeline_mode<synchronous>, transform_indices = @transform_9, window_bounds = array<i64: 128, 256>}, {pipeline_mode = #tpu.pipeline_mode<synchronous>, transform_indices = @transform_10, window_bounds = array<i64: 1, 256>}, {pipeline_mode = #tpu.pipeline_mode<synchronous>, transform_indices = @transform_11, window_bounds = array<i64: 256, 512>}, {pipeline_mode = #tpu.pipeline_mode<synchronous>, transform_indices = @transform_12, window_bounds = array<i64: 1, 512>}, {transform_indices = @transform_13, window_bounds = array<i64: 8, 512>}]} {
    %c0 = arith.constant 0 : index
    %c0_0 = arith.constant 0 : index
    %0 = vector.load %arg1[%c0, %c0_0] : memref<8x512xbf16, #tpu.memory_space<vmem>>, vector<8x512xbf16>
    %c0_1 = arith.constant 0 : index
    %c0_2 = arith.constant 0 : index
    %1 = vector.load %arg2[%c0_1, %c0_2] : memref<512x256xbf16, #tpu.memory_space<vmem>>, vector<512x256xbf16>
    %cst = arith.constant dense<0.000000e+00> : vector<8x256xf32>
    %2 = tpu.matmul %0, %1, %cst {dimension_numbers = #tpu.dot_dimension_numbers<[1], [0], [0], [1], [0, 0, 1, 1], [], []>} : vector<8x512xbf16>, vector<512x256xbf16>, vector<8x256xf32> -> vector<8x256xf32>
    %c0_3 = arith.constant 0 : index
    %c0_4 = arith.constant 0 : index
    %3 = vector.load %arg3[%c0_3, %c0_4] : memref<1x256xf32, #tpu.memory_space<vmem>>, vector<1x256xf32>
    %4 = vector.broadcast %3 : vector<1x256xf32> to vector<8x256xf32>
    %5 = arith.addf %2, %4 : vector<8x256xf32>
    %6 = math.tanh %5 : vector<8x256xf32>
    %7 = arith.truncf %6 : vector<8x256xf32> to vector<8x256xbf16>
    %c0_5 = arith.constant 0 : index
    %c0_6 = arith.constant 0 : index
    %8 = vector.load %arg4[%c0_5, %c0_6] : memref<256x128xbf16, #tpu.memory_space<vmem>>, vector<256x128xbf16>
    %cst_7 = arith.constant dense<0.000000e+00> : vector<8x128xf32>
    %9 = tpu.matmul %7, %8, %cst_7 {dimension_numbers = #tpu.dot_dimension_numbers<[1], [0], [0], [1], [0, 0, 1, 1], [], []>} : vector<8x256xbf16>, vector<256x128xbf16>, vector<8x128xf32> -> vector<8x128xf32>
    %c0_8 = arith.constant 0 : index
    %c0_9 = arith.constant 0 : index
    %10 = vector.load %arg5[%c0_8, %c0_9] : memref<1x128xf32, #tpu.memory_space<vmem>>, vector<1x128xf32>
    %11 = vector.broadcast %10 : vector<1x128xf32> to vector<8x128xf32>
    %12 = arith.addf %9, %11 : vector<8x128xf32>
    %13 = math.tanh %12 : vector<8x128xf32>
    %14 = arith.truncf %13 : vector<8x128xf32> to vector<8x128xbf16>
    %c0_10 = arith.constant 0 : index
    %c0_11 = arith.constant 0 : index
    %15 = vector.load %arg6[%c0_10, %c0_11] : memref<128x64xbf16, #tpu.memory_space<vmem>>, vector<128x64xbf16>
    %cst_12 = arith.constant dense<0.000000e+00> : vector<8x64xf32>
    %16 = tpu.matmul %14, %15, %cst_12 {dimension_numbers = #tpu.dot_dimension_numbers<[1], [0], [0], [1], [0, 0, 1, 1], [], []>} : vector<8x128xbf16>, vector<128x64xbf16>, vector<8x64xf32> -> vector<8x64xf32>
    %c0_13 = arith.constant 0 : index
    %c0_14 = arith.constant 0 : index
    %17 = vector.load %arg7[%c0_13, %c0_14] : memref<1x64xf32, #tpu.memory_space<vmem>>, vector<1x64xf32>
    %18 = vector.broadcast %17 : vector<1x64xf32> to vector<8x64xf32>
    %19 = arith.addf %16, %18 : vector<8x64xf32>
    %20 = math.tanh %19 : vector<8x64xf32>
    %21 = arith.truncf %20 : vector<8x64xf32> to vector<8x64xbf16>
    %c0_15 = arith.constant 0 : index
    %c0_16 = arith.constant 0 : index
    %22 = vector.load %arg8[%c0_15, %c0_16] : memref<64x128xbf16, #tpu.memory_space<vmem>>, vector<64x128xbf16>
    %cst_17 = arith.constant dense<0.000000e+00> : vector<8x128xf32>
    %23 = tpu.matmul %21, %22, %cst_17 {dimension_numbers = #tpu.dot_dimension_numbers<[1], [0], [0], [1], [0, 0, 1, 1], [], []>} : vector<8x64xbf16>, vector<64x128xbf16>, vector<8x128xf32> -> vector<8x128xf32>
    %c0_18 = arith.constant 0 : index
    %c0_19 = arith.constant 0 : index
    %24 = vector.load %arg9[%c0_18, %c0_19] : memref<1x128xf32, #tpu.memory_space<vmem>>, vector<1x128xf32>
    %25 = vector.broadcast %24 : vector<1x128xf32> to vector<8x128xf32>
    %26 = arith.addf %23, %25 : vector<8x128xf32>
    %27 = math.tanh %26 : vector<8x128xf32>
    %28 = arith.truncf %27 : vector<8x128xf32> to vector<8x128xbf16>
    %c0_20 = arith.constant 0 : index
    %c0_21 = arith.constant 0 : index
    %29 = vector.load %arg10[%c0_20, %c0_21] : memref<128x256xbf16, #tpu.memory_space<vmem>>, vector<128x256xbf16>
    %cst_22 = arith.constant dense<0.000000e+00> : vector<8x256xf32>
    %30 = tpu.matmul %28, %29, %cst_22 {dimension_numbers = #tpu.dot_dimension_numbers<[1], [0], [0], [1], [0, 0, 1, 1], [], []>} : vector<8x128xbf16>, vector<128x256xbf16>, vector<8x256xf32> -> vector<8x256xf32>
    %c0_23 = arith.constant 0 : index
    %c0_24 = arith.constant 0 : index
    %31 = vector.load %arg11[%c0_23, %c0_24] : memref<1x256xf32, #tpu.memory_space<vmem>>, vector<1x256xf32>
    %32 = vector.broadcast %31 : vector<1x256xf32> to vector<8x256xf32>
    %33 = arith.addf %30, %32 : vector<8x256xf32>
    %34 = math.tanh %33 : vector<8x256xf32>
    %35 = arith.truncf %34 : vector<8x256xf32> to vector<8x256xbf16>
    %c0_25 = arith.constant 0 : index
    %c0_26 = arith.constant 0 : index
    %36 = vector.load %arg12[%c0_25, %c0_26] : memref<256x512xbf16, #tpu.memory_space<vmem>>, vector<256x512xbf16>
    %cst_27 = arith.constant dense<0.000000e+00> : vector<8x512xf32>
    %37 = tpu.matmul %35, %36, %cst_27 {dimension_numbers = #tpu.dot_dimension_numbers<[1], [0], [0], [1], [0, 0, 1, 1], [], []>} : vector<8x256xbf16>, vector<256x512xbf16>, vector<8x512xf32> -> vector<8x512xf32>
    %c0_28 = arith.constant 0 : index
    %c0_29 = arith.constant 0 : index
    %38 = vector.load %arg13[%c0_28, %c0_29] : memref<1x512xf32, #tpu.memory_space<vmem>>, vector<1x512xf32>
    %39 = vector.broadcast %38 : vector<1x512xf32> to vector<8x512xf32>
    %40 = arith.addf %37, %39 : vector<8x512xf32>
    %cst_30 = arith.constant 5.000000e-01 : f32
    %41 = vector.broadcast %cst_30 : f32 to vector<8x512xf32>
    %42 = arith.mulf %41, %40 : vector<8x512xf32>
    %43 = math.tanh %42 : vector<8x512xf32>
    %cst_31 = arith.constant 5.000000e-01 : f32
    %44 = vector.broadcast %cst_31 : f32 to vector<8x512xf32>
    %45 = arith.mulf %44, %43 : vector<8x512xf32>
    %cst_32 = arith.constant 5.000000e-01 : f32
    %46 = vector.broadcast %cst_32 : f32 to vector<8x512xf32>
    %47 = arith.addf %45, %46 : vector<8x512xf32>
    %48 = arith.truncf %47 : vector<8x512xf32> to vector<8x512xbf16>
    %c0_33 = arith.constant 0 : index
    %c0_34 = arith.constant 0 : index
    %49 = vector.load %arg14[%c0_33, %c0_34] : memref<8x512xbf16, #tpu.memory_space<vmem>>, vector<8x512xbf16>
    tpu.vector_store %arg14[%c0_33, %c0_34], %48 {strides = array<i32>} : memref<8x512xbf16, #tpu.memory_space<vmem>>, vector<8x512xbf16>,
    return
  }
  func.func @transform_0(%arg0: i32) -> (i32, i32) {
    %c0_i32 = arith.constant 0 : i32
    %c0_i32_0 = arith.constant 0 : i32
    return %arg0, %c0_i32 : i32, i32
  }
  func.func @transform_1(%arg0: i32) -> (i32, i32) {
    %c0_i32 = arith.constant 0 : i32
    %c0_i32_0 = arith.constant 0 : i32
    %c0_i32_1 = arith.constant 0 : i32
    return %c0_i32, %c0_i32_0 : i32, i32
  }
  func.func @transform_2(%arg0: i32) -> (i32, i32) {
    %c0_i32 = arith.constant 0 : i32
    %c0_i32_0 = arith.constant 0 : i32
    %c0_i32_1 = arith.constant 0 : i32
    return %c0_i32, %c0_i32_0 : i32, i32
  }
  func.func @transform_3(%arg0: i32) -> (i32, i32) {
    %c0_i32 = arith.constant 0 : i32
    %c0_i32_0 = arith.constant 0 : i32
    %c0_i32_1 = arith.constant 0 : i32
    return %c0_i32, %c0_i32_0 : i32, i32
  }
  func.func @transform_4(%arg0: i32) -> (i32, i32) {
    %c0_i32 = arith.constant 0 : i32
    %c0_i32_0 = arith.constant 0 : i32
    %c0_i32_1 = arith.constant 0 : i32
    return %c0_i32, %c0_i32_0 : i32, i32
  }
  func.func @transform_5(%arg0: i32) -> (i32, i32) {
    %c0_i32 = arith.constant 0 : i32
    %c0_i32_0 = arith.constant 0 : i32
    %c0_i32_1 = arith.constant 0 : i32
    return %c0_i32, %c0_i32_0 : i32, i32
  }
  func.func @transform_6(%arg0: i32) -> (i32, i32) {
    %c0_i32 = arith.constant 0 : i32
    %c0_i32_0 = arith.constant 0 : i32
    %c0_i32_1 = arith.constant 0 : i32
    return %c0_i32, %c0_i32_0 : i32, i32
  }
  func.func @transform_7(%arg0: i32) -> (i32, i32) {
    %c0_i32 = arith.constant 0 : i32
    %c0_i32_0 = arith.constant 0 : i32
    %c0_i32_1 = arith.constant 0 : i32
    return %c0_i32, %c0_i32_0 : i32, i32
  }
  func.func @transform_8(%arg0: i32) -> (i32, i32) {
    %c0_i32 = arith.constant 0 : i32
    %c0_i32_0 = arith.constant 0 : i32
    %c0_i32_1 = arith.constant 0 : i32
    return %c0_i32, %c0_i32_0 : i32, i32
  }
  func.func @transform_9(%arg0: i32) -> (i32, i32) {
    %c0_i32 = arith.constant 0 : i32
    %c0_i32_0 = arith.constant 0 : i32
    %c0_i32_1 = arith.constant 0 : i32
    return %c0_i32, %c0_i32_0 : i32, i32
  }
  func.func @transform_10(%arg0: i32) -> (i32, i32) {
    %c0_i32 = arith.constant 0 : i32
    %c0_i32_0 = arith.constant 0 : i32
    %c0_i32_1 = arith.constant 0 : i32
    return %c0_i32, %c0_i32_0 : i32, i32
  }
  func.func @transform_11(%arg0: i32) -> (i32, i32) {
    %c0_i32 = arith.constant 0 : i32
    %c0_i32_0 = arith.constant 0 : i32
    %c0_i32_1 = arith.constant 0 : i32
    return %c0_i32, %c0_i32_0 : i32, i32
  }
  func.func @transform_12(%arg0: i32) -> (i32, i32) {
    %c0_i32 = arith.constant 0 : i32
    %c0_i32_0 = arith.constant 0 : i32
    %c0_i32_1 = arith.constant 0 : i32
    return %c0_i32, %c0_i32_0 : i32, i32
  }
  func.func @transform_13(%arg0: i32) -> (i32, i32) {
    %c0_i32 = arith.constant 0 : i32
    %c0_i32_0 = arith.constant 0 : i32
    return %arg0, %c0_i32 : i32, i32
  }
}

</mosaic_0001>

<bundles_post_ra>
// kernel: _ae_pallas.1
= control target key start
LH: loop header
LB: loop body
LE: loop exit
PB: predicated region body
PF: predicated region fallthrough
CT: control target
= control target key end

     0   :  { %18 = vsyncpa [#allocation3], 0  ;;  %s2499_s0 = inlined_call_operand.vmem [shape: bf16[8,512], index: 0, kind: input, shape index: {}]   ;;  %s2500_s1 = inlined_call_operand.hbm [shape: bf16[512,256], index: 1, kind: input, shape index: {}]   ;;  %s2501_s2 = inlined_call_operand.vmem [shape: f32[1,256], index: 2, kind: input, shape index: {}]   ;;  %s2502_s3 = inlined_call_operand.hbm [shape: bf16[256,128], index: 3, kind: input, shape index: {}]   ;;  %s2503_s4 = inlined_call_operand.vmem [shape: f32[1,128], index: 4, kind: input, shape index: {}]   ;;  %s2504_s5 = inlined_call_operand.vmem [shape: bf16[128,64], index: 5, kind: input, shape index: {}]   ;;  %s2505_s6 = inlined_call_operand.vmem [shape: f32[1,64], index: 6, kind: input, shape index: {}]   ;;  %s2506_s7 = inlined_call_operand.vmem [shape: bf16[64,128], index: 7, kind: input, shape index: {}]   ;;  %s2507_s8 = inlined_call_operand.vmem [shape: f32[1,128], index: 8, kind: input, shape index: {}]   ;;  %s2508_s9 = inlined_call_operand.hbm [shape: bf16[128,256], index: 9, kind: input, shape index: {}]   ;;  %s2509_s10 = inlined_call_operand.vmem [shape: f32[1,256], index: 10, kind: input, shape index: {}]   ;;  %s2510_s11 = inlined_call_operand.hbm [shape: bf16[256,512], index: 11, kind: input, shape index: {}]   ;;  %s2511_s12 = inlined_call_operand.vmem [shape: f32[1,512], index: 12, kind: input, shape index: {}]   ;;  %s2512_s13 = inlined_call_operand.hbm [shape: bf16[8,512], index: 13, kind: output, shape index: {}]  }
   0x1   :  { %19 = vsyncpa [#allocation6], 0 }
   0x2   :  { %20 = vsyncpa [#allocation9], 0 }
   0x3   :  { %21 = vsyncpa [#allocation4], 0  ;;  %s2310_s25 = smov [#allocation5]  }
   0x4   :  { %s43_s26 = sshll.u32 %s2310_s25, 4  ;;  %s44_s26 = int_to_ptr.vmem [resolvable:$true] %s43_s26 }
   0x5   :  { %s2210_s27 = scalar_lea.vmem %s44_s26, 2048  ;;  %p2215_p1 = scmp.lt.s32.totalorder %s44_s26, %s44_s26 }
   0x6   :  { %p2211_p0 = scmp.ne.s32.totalorder %s44_s26, %s2210_s27  ;;  %p2216_p2 = scmp.lt.s32.totalorder %s2210_s27, %s2210_s27 }
   0x8   :  { %p2217_p3 = por %p2216_p2, %p2215_p1 }
   0xa   :  { %p2218_p4 = pnand %p2217_p3, %p2211_p0 }
   0xc   :  { %2221 = shalt.err (!%p2218_p4)
}
   0xd   :  { %s2311_s28 = smov 64   ;;  %s2312_s29 = smov 4  }
   0xe   :  { %49 = dma.hbm_to_vmem [thread:$0]  %s2502_s3, 2048, %s44_s26, [#allocation6], %s2311_s28, %s2311_s28, %s2312_s29  }
   0xf   :  { %s2313_s15 = smov [#allocation2]  }
  0x10   :  { %s29_s16 = sshll.u32 %s2313_s15, 4  ;;  %s30_s16 = int_to_ptr.vmem [resolvable:$true] %s29_s16 }
  0x11   :  { %s2230_s17 = scalar_lea.vmem %s30_s16, 8192  ;;  %p2235_p6 = scmp.lt.s32.totalorder %s30_s16, %s30_s16 }
  0x12   :  { %p2231_p5 = scmp.ne.s32.totalorder %s30_s16, %s2230_s17  ;;  %p2236_p7 = scmp.lt.s32.totalorder %s2230_s17, %s2230_s17 }
  0x14   :  { %p2237_p8 = por %p2236_p7, %p2235_p6 }
  0x16   :  { %p2238_p9 = pnand %p2237_p8, %p2231_p5 }
  0x18   :  { %2241 = shalt.err (!%p2238_p9)
}
  0x19   :  { %s2314_s18 = smov 128   ;;  %s2315_s19 = smov 8  }
  0x1a   :  { %35 = dma.hbm_to_vmem [thread:$0]  %s2500_s1, 8192, %s30_s16, [#allocation3], %s2314_s18, %s2314_s18, %s2315_s19  }
  0x1b   :  { %s2316_s22 = smov [#allocation7]   ;;  %s2317_s24 = smov [#allocation8]  }
  0x1c   :  { %s65_s23 = sshll.u32 %s2316_s22, 4  ;;  %s79_s3 = sshll.u32 %s2317_s24, 4  ;;  %s66_s23 = int_to_ptr.vmem [resolvable:$true] %s65_s23  ;;  %s80_s3 = int_to_ptr.vmem [resolvable:$true] %s79_s3 }
  0x1d   :  { %s2250_s25 = scalar_lea.vmem %s66_s23, 2048  ;;  %p2255_p11 = scmp.lt.s32.totalorder %s66_s23, %s66_s23 }
  0x1e   :  { %p2251_p10 = scmp.ne.s32.totalorder %s66_s23, %s2250_s25  ;;  %p2256_p12 = scmp.lt.s32.totalorder %s2250_s25, %s2250_s25 }
  0x20   :  { %p2257_p13 = por %p2256_p12, %p2255_p11 }
  0x22   :  { %p2258_p0 = pnand %p2257_p13, %p2251_p10 }
  0x24   :  { %2261 = shalt.err (!%p2258_p0)
}
  0x25   :  { %71 = dma.hbm_to_vmem [thread:$0]  %s2508_s9, 2048, %s66_s23, [#allocation6], %s2314_s18, %s2314_s18, %s2315_s19  }
  0x26   :  { %s2270_s28 = scalar_lea.vmem %s80_s3, 8192  ;;  %p2275_p2 = scmp.lt.s32.totalorder %s80_s3, %s80_s3 }
  0x27   :  { %p2271_p1 = scmp.ne.s32.totalorder %s80_s3, %s2270_s28  ;;  %p2276_p3 = scmp.lt.s32.totalorder %s2270_s28, %s2270_s28 }
  0x29   :  { %p2277_p4 = por %p2276_p3, %p2275_p2 }
  0x2b   :  { %p2278_p5 = pnand %p2277_p4, %p2271_p1 }
  0x2d   :  { %2281 = shalt.err (!%p2278_p5)
}
  0x2e   :  { %s2318_s1 = smov 256   ;;  %s2319_s29 = smov 16  }
  0x2f   :  { %85 = dma.hbm_to_vmem [thread:$0]  %s2510_s11, 8192, %s80_s3, [#allocation9], %s2318_s1, %s2318_s1, %s2319_s29  }
  0x30   :  { %2302 = dma.done.wait [#allocation3], 8192  }
  0x31   :  { %2303 = vsyncadd [#allocation3], 4294959104 }
  0x32   :  { %2304 = dma.done.wait [#allocation6], 4096  }
  0x33   :  { %2305 = vsyncadd [#allocation6], 4294963200 }
  0x34   :  { %2306 = dma.done.wait [#allocation9], 8192  }
  0x35   :  { %2307 = vsyncadd [#allocation9], 4294959104  ;;  %v1932_v0 = vld [vmem:[#allocation2 + $0x74] ss:$8 sps:$4 sm:$0xff]   ;;  %v1936_v2 = vld [vmem:[#allocation2 + $0x70] ss:$8 sps:$4 sm:$0xff]  }
  0x36   :  { %v1934_v1 = vld [vmem:[#allocation2 + $0x174] ss:$8 sps:$4 sm:$0xff]   ;;  %513 = vmatprep.subr.bf16.mxu0 %v1932_v0  ;;  %v1937_v3 = vld [vmem:[#allocation2 + $0x170] ss:$8 sps:$4 sm:$0xff]   ;;  %v1938_v4 = vld [vmem:[#allocation2 + $0x64] ss:$8 sps:$4 sm:$0xff]  }
  0x37   :  { %554 = vmatprep.subr.bf16.mxu1 %v1934_v1  ;;  %514 = vmatpush1.bf16.msra.mxu0 %v1936_v2  ;;  %v1940_v5 = vld [vmem:[#allocation2 + $0x164] ss:$8 sps:$4 sm:$0xff]   ;;  %v1942_v6 = vld [vmem:[#allocation2 + $0x60] ss:$8 sps:$4 sm:$0xff]   ;;  %v1944_v8 = vld [vmem:[#allocation2 + $0x54] ss:$8 sps:$4 sm:$0xff]  }
  0x38   :  { %555 = vmatpush1.bf16.msra.mxu1 %v1937_v3  ;;  %515 = vmatprep.subr.bf16.mxu0 %v1938_v4  ;;  %v1943_v7 = vld [vmem:[#allocation2 + $0x160] ss:$8 sps:$4 sm:$0xff]   ;;  %v1946_v9 = vld [vmem:[#allocation2 + $0x154] ss:$8 sps:$4 sm:$0xff]   ;;  %v1948_v10 = vld [vmem:[#allocation2 + $0x50] ss:$8 sps:$4 sm:$0xff]  }
  0x39   :  { %556 = vmatprep.subr.bf16.mxu1 %v1940_v5  ;;  %v1949_v11 = vld [vmem:[#allocation2 + $0x150] ss:$8 sps:$4 sm:$0xff]   ;;  %v1950_v12 = vld [vmem:[#allocation2 + $0x44] ss:$8 sps:$4 sm:$0xff]   ;;  %v1954_v14 = vld [vmem:[#allocation2 + $0x40] ss:$8 sps:$4 sm:$0xff]  }
  0x3a   :  { %v1952_v13 = vld [vmem:[#allocation2 + $0x144] ss:$8 sps:$4 sm:$0xff]   ;;  %v1955_v15 = vld [vmem:[#allocation2 + $0x140] ss:$8 sps:$4 sm:$0xff]   ;;  %v1956_v16 = vld [vmem:[#allocation2 + $0x34] ss:$8 sps:$4 sm:$0xff]  }
  0x3b   :  { %516 = vmatpush1.bf16.msra.mxu0 %v1942_v6  ;;  %v1958_v17 = vld [vmem:[#allocation2 + $0x134] ss:$8 sps:$4 sm:$0xff]   ;;  %v1960_v18 = vld [vmem:[#allocation2 + $0x30] ss:$8 sps:$4 sm:$0xff]   ;;  %v1962_v20 = vld [vmem:[#allocation2 + $0x24] ss:$8 sps:$4 sm:$0xff]  }
  0x3c   :  { %557 = vmatpush1.bf16.msra.mxu1 %v1943_v7  ;;  %517 = vmatprep.subr.bf16.mxu0 %v1944_v8  ;;  %v1961_v19 = vld [vmem:[#allocation2 + $0x130] ss:$8 sps:$4 sm:$0xff]   ;;  %v1964_v21 = vld [vmem:[#allocation2 + $0x124] ss:$8 sps:$4 sm:$0xff]   ;;  %v1966_v22 = vld [vmem:[#allocation2 + $0x20] ss:$8 sps:$4 sm:$0xff]  }
  0x3d   :  { %558 = vmatprep.subr.bf16.mxu1 %v1946_v9  ;;  %v1967_v23 = vld [vmem:[#allocation2 + $0x120] ss:$8 sps:$4 sm:$0xff]   ;;  %v1968_v24 = vld [vmem:[#allocation2 + $0x14] ss:$8 sps:$4 sm:$0xff]   ;;  %v1972_v26 = vld [vmem:[#allocation2 + $0x10] ss:$8 sps:$4 sm:$0xff]  }
  0x3e   :  { %v1970_v25 = vld [vmem:[#allocation2 + $0x114] ss:$8 sps:$4 sm:$0xff]   ;;  %v1973_v27 = vld [vmem:[#allocation2 + $0x110] ss:$8 sps:$4 sm:$0xff]   ;;  %v1974_v28 = vld [vmem:[#allocation2 + $0x4] ss:$8 sps:$4 sm:$0xff]  }
  0x3f   :  { %518 = vmatpush1.bf16.msra.mxu0 %v1948_v10  ;;  %v1976_v29 = vld [vmem:[#allocation2 + $0x104] ss:$8 sps:$4 sm:$0xff]   ;;  %v1978_v30 = vld [vmem:[#allocation2] ss:$8 sps:$4 sm:$0xff]   ;;  %v1980_v32 = vld [vmem:[#allocation2 + $0xf4] ss:$8 sps:$4 sm:$0xff]  }
  0x40   :  { %559 = vmatpush1.bf16.msra.mxu1 %v1949_v11  ;;  %519 = vmatprep.subr.bf16.mxu0 %v1950_v12  ;;  %v1979_v31 = vld [vmem:[#allocation2 + $0x100] ss:$8 sps:$4 sm:$0xff]   ;;  %v1982_v33 = vld [vmem:[#allocation2 + $0x1f4] ss:$8 sps:$4 sm:$0xff]   ;;  %v1984_v34 = vld [vmem:[#allocation2 + $0xf0] ss:$8 sps:$4 sm:$0xff]  }
  0x41   :  { %560 = vmatprep.subr.bf16.mxu1 %v1952_v13  ;;  %v1985_v35 = vld [vmem:[#allocation2 + $0x1f0] ss:$8 sps:$4 sm:$0xff]   ;;  %v1986_v36 = vld [vmem:[#allocation2 + $0xe4] ss:$8 sps:$4 sm:$0xff]   ;;  %v1990_v38 = vld [vmem:[#allocation2 + $0xe0] ss:$8 sps:$4 sm:$0xff]  }
  0x42   :  { %v1988_v37 = vld [vmem:[#allocation2 + $0x1e4] ss:$8 sps:$4 sm:$0xff]   ;;  %v1991_v39 = vld [vmem:[#allocation2 + $0x1e0] ss:$8 sps:$4 sm:$0xff]   ;;  %v1992_v40 = vld [vmem:[#allocation2 + $0xd4] ss:$8 sps:$4 sm:$0xff]  }
  0x43   :  { %520 = vmatpush1.bf16.msra.mxu0 %v1954_v14  ;;  %v1994_v41 = vld [vmem:[#allocation2 + $0x1d4] ss:$8 sps:$4 sm:$0xff]   ;;  %v1996_v42 = vld [vmem:[#allocation2 + $0xd0] ss:$8 sps:$4 sm:$0xff]   ;;  %v1998_v44 = vld [vmem:[#allocation2 + $0xc4] ss:$8 sps:$4 sm:$0xff]  }
  0x44   :  { %561 = vmatpush1.bf16.msra.mxu1 %v1955_v15  ;;  %521 = vmatprep.subr.bf16.mxu0 %v1956_v16  ;;  %v1997_v43 = vld [vmem:[#allocation2 + $0x1d0] ss:$8 sps:$4 sm:$0xff]   ;;  %v2000_v45 = vld [vmem:[#allocation2 + $0x1c4] ss:$8 sps:$4 sm:$0xff]   ;;  %v2002_v46 = vld [vmem:[#allocation2 + $0xc0] ss:$8 sps:$4 sm:$0xff]  }
  0x45   :  { %562 = vmatprep.subr.bf16.mxu1 %v1958_v17  ;;  %v2003_v47 = vld [vmem:[#allocation2 + $0x1c0] ss:$8 sps:$4 sm:$0xff]   ;;  %v2004_v51 = vld [vmem:[#allocation2 + $0xb4] ss:$8 sps:$4 sm:$0xff]   ;;  %v2008_v54 = vld [vmem:[#allocation2 + $0xb0] ss:$8 sps:$4 sm:$0xff]  }
  0x46   :  { %v101_v48 = vld [vmem:[%s2499_s0] sm:$0xff]  ;;  %v102_v50 = vld [vmem:[%s2499_s0 + $0x8] sm:$0xff]  ;;  %v2006_v53 = vld [vmem:[#allocation2 + $0x1b4] ss:$8 sps:$4 sm:$0xff]   ;;  %vm2321_vm0 = vmmov 0   ;;  %vm928_vm1 = vcmask 523264  }
  0x47   :  { %522 = vmatpush1.bf16.msra.mxu0 %v1960_v18  ;;  %v1667_v49 = vcombine.high %v101_v48, %v101_v48  ;;  %v1669_v52 = vcombine.high %v102_v50, %v102_v50  ;;  %v2009_v55 = vld [vmem:[#allocation2 + $0x1b0] ss:$8 sps:$4 sm:$0xff]   ;;  %v2010_v56 = vld [vmem:[#allocation2 + $0xa4] ss:$8 sps:$4 sm:$0xff]   ;;  %v2014_v58 = vld [vmem:[#allocation2 + $0xa0] ss:$8 sps:$4 sm:$0xff]   ;;  %v1666_v6 = vcombine.low %v101_v48, %v101_v48  ;;  %v1668_v7 = vcombine.low %v102_v50, %v102_v50 }
  0x48   :  { %563 = vmatpush1.bf16.msra.mxu1 %v1961_v19  ;;  %523 = vmatprep.subr.bf16.mxu0 %v1962_v20  ;;  %v2012_v57 = vld [vmem:[#allocation2 + $0x1a4] ss:$8 sps:$4 sm:$0xff]   ;;  %v2015_v59 = vld [vmem:[#allocation2 + $0x1a0] ss:$8 sps:$4 sm:$0xff]   ;;  %v2016_v60 = vld [vmem:[#allocation2 + $0x94] ss:$8 sps:$4 sm:$0xff]  }
  0x49   :  { %564 = vmatprep.subr.bf16.mxu1 %v1964_v21  ;;  %545 = vmatprep.mubr.bf16.mxu0 %v1667_v49  ;;  %v2018_v61 = vld [vmem:[#allocation2 + $0x194] ss:$8 sps:$4 sm:$0xff]   ;;  %v2020_v62 = vld [vmem:[#allocation2 + $0x90] ss:$8 sps:$4 sm:$0xff]   ;;  %v2022_v0 = vld [vmem:[#allocation2 + $0x84] ss:$8 sps:$4 sm:$0xff]  }
  0x4a   :  { %586 = vmatprep.mubr.bf16.mxu1 %v1669_v52  ;;  %v2021_v63 = vld [vmem:[#allocation2 + $0x190] ss:$8 sps:$4 sm:$0xff]   ;;  %v2024_v1 = vld [vmem:[#allocation2 + $0x184] ss:$8 sps:$4 sm:$0xff]   ;;  %v2026_v2 = vld [vmem:[#allocation2 + $0x80] ss:$8 sps:$4 sm:$0xff]  }
  0x4b   :  { %524 = vmatpush1.bf16.msra.mxu0 %v1966_v22  ;;  %v2027_v3 = vld [vmem:[#allocation2 + $0x180] ss:$8 sps:$4 sm:$0xff]   ;;  %v2032_v4 = vld [vmem:[#allocation5 + $0x78] sm:$0xff]   ;;  %v2034_v8 = vld [vmem:[#allocation5 + $0x70] sm:$0xff]  }
  0x4c   :  { %565 = vmatpush1.bf16.msra.mxu1 %v1967_v23  ;;  %525 = vmatprep.subr.bf16.mxu0 %v1968_v24  ;;  %v2033_v5 = vld [vmem:[#allocation5 + $0x38] sm:$0xff]   ;;  %v2035_v9 = vld [vmem:[#allocation5 + $0x30] sm:$0xff]   ;;  %v2036_v10 = vld [vmem:[#allocation5 + $0x68] sm:$0xff]   ;;  %v2320_v23 = vmov 0.0  }
  0x4d   :  { %566 = vmatprep.subr.bf16.mxu1 %v1970_v25  ;;  %v2037_v11 = vld [vmem:[#allocation5 + $0x28] sm:$0xff]   ;;  %v2038_v12 = vld [vmem:[#allocation5 + $0x60] sm:$0xff]   ;;  %v2040_v14 = vld [vmem:[#allocation5 + $0x58] sm:$0xff]   ;;  %v169_v25 = vlaneseq }
  0x4e   :  { %v2039_v13 = vld [vmem:[#allocation5 + $0x20] sm:$0xff]   ;;  %v2041_v15 = vld [vmem:[#allocation5 + $0x18] sm:$0xff]   ;;  %v2042_v16 = vld [vmem:[#allocation5 + $0x50] sm:$0xff]  }
  0x4f   :  { %526 = vmatpush1.bf16.msra.mxu0 %v1972_v26  ;;  %v2043_v17 = vld [vmem:[#allocation5 + $0x10] sm:$0xff]   ;;  %v2044_v18 = vld [vmem:[#allocation5 + $0x48] sm:$0xff]   ;;  %v2046_v20 = vld [vmem:[#allocation5 + $0x40] sm:$0xff]   ;;  %v2422_v26 = vshrl.u32 %v169_v25, 7 }
  0x50   :  { %567 = vmatpush1.bf16.msra.mxu1 %v1973_v27  ;;  %527 = vmatprep.subr.bf16.mxu0 %v1974_v28  ;;  %v2045_v19 = vld [vmem:[#allocation5 + $0x8] sm:$0xff]   ;;  %v2047_v21 = vld [vmem:[#allocation5] sm:$0xff]   ;;  %v2048_v22 = vld [vmem:[%s2504_s5 + $0x38] sm:$0xff]  }
  0x51   :  { %568 = vmatprep.subr.bf16.mxu1 %v1976_v29  ;;  %v2049_v24 = vld [vmem:[%s2504_s5 + $0x30] sm:$0xff]   ;;  %v2425_v27 = vsub.s32 0, %v2422_v26  ;;  %v167_v28 = vld [vmem:[%s2501_s2] sm:$0x3]  ;;  %v2431_v29 = vsub.s32 1, %v2422_v26  ;;  %v2050_v48 = vld [vmem:[%s2504_s5 + $0x28] sm:$0xff]  }
  0x52   :  { %v2051_v49 = vld [vmem:[%s2504_s5 + $0x20] sm:$0xff]   ;;  %v2052_v50 = vld [vmem:[%s2504_s5 + $0x18] sm:$0xff]   ;;  %v2054_v52 = vld [vmem:[%s2504_s5 + $0x8] sm:$0xff]  }
  0x53   :  { %528 = vmatpush1.bf16.msra.mxu0 %v1978_v30  ;;  %v172_v30 = vrot.slane %v167_v28, %v2425_v27  ;;  %v2083_v25 = vld [vmem:[#allocation7 + $0x4] ss:$8 sps:$4 sm:$0xff]  }
  0x54   :  { %569 = vmatpush1.bf16.msra.mxu1 %v1979_v31  ;;  %529 = vmatprep.subr.bf16.mxu0 %v1980_v32  ;;  %v176_v31 = vrot.slane %v167_v28, %v2431_v29  ;;  %v2081_v28 = vld [vmem:[#allocation7] ss:$8 sps:$4 sm:$0xff]  }
  0x55   :  { %570 = vmatprep.subr.bf16.mxu1 %v1982_v33 }
  0x57   :  { %530 = vmatpush2.bf16.msra.mxu0 %v1984_v34 }
  0x58   :  { %571 = vmatpush2.bf16.msra.mxu1 %v1985_v35  ;;  %531 = vmatprep.subr.bf16.mxu0 %v1986_v36 }
  0x59   :  { %572 = vmatprep.subr.bf16.mxu1 %v1988_v37 }
  0x5b   :  { %532 = vmatpush2.bf16.msra.mxu0 %v1990_v38 }
  0x5c   :  { %573 = vmatpush2.bf16.msra.mxu1 %v1991_v39  ;;  %533 = vmatprep.subr.bf16.mxu0 %v1992_v40 }
  0x5d   :  { %574 = vmatprep.subr.bf16.mxu1 %v1994_v41 }
  0x5f   :  { %534 = vmatpush2.bf16.msra.mxu0 %v1996_v42 }
  0x60   :  { %575 = vmatpush2.bf16.msra.mxu1 %v1997_v43  ;;  %535 = vmatprep.subr.bf16.mxu0 %v1998_v44 }
  0x61   :  { %576 = vmatprep.subr.bf16.mxu1 %v2000_v45 }
  0x63   :  { %536 = vmatpush2.bf16.msra.mxu0 %v2002_v46 }
  0x64   :  { %577 = vmatpush2.bf16.msra.mxu1 %v2003_v47  ;;  %537 = vmatprep.subr.bf16.mxu0 %v2004_v51  ;;  %v2053_v51 = vld [vmem:[%s2504_s5 + $0x10] sm:$0xff]  }
  0x65   :  { %578 = vmatprep.subr.bf16.mxu1 %v2006_v53  ;;  %v2055_v53 = vld [vmem:[%s2504_s5] sm:$0xff]  }
  0x67   :  { %538 = vmatpush2.bf16.msra.mxu0 %v2008_v54 }
  0x68   :  { %579 = vmatpush2.bf16.msra.mxu1 %v2009_v55  ;;  %539 = vmatprep.subr.bf16.mxu0 %v2010_v56  ;;  %v1734_v55 = vld [vmem:[%s2503_s4] ss:$0 sm:$0xff] }
  0x69   :  { %580 = vmatprep.subr.bf16.mxu1 %v2012_v57 }
  0x6b   :  { %540 = vmatpush2.bf16.msra.mxu0 %v2014_v58 }
  0x6c   :  { %581 = vmatpush2.bf16.msra.mxu1 %v2015_v59  ;;  %541 = vmatprep.subr.bf16.mxu0 %v2016_v60 }
  0x6d   :  { %582 = vmatprep.subr.bf16.mxu1 %v2018_v61 }
  0x6f   :  { %542 = vmatpush2.bf16.msra.mxu0 %v2020_v62 }
  0x70   :  { %583 = vmatpush2.bf16.msra.mxu1 %v2021_v63  ;;  %543 = vmatprep.subr.bf16.mxu0 %v2022_v0  ;;  %v2056_v63 = vld [vmem:[%s2506_s7 + $0x18] sm:$0xff]   ;;  %v2057_v0 = vld [vmem:[%s2506_s7 + $0x10] sm:$0xff]  }
  0x71   :  { %584 = vmatprep.subr.bf16.mxu1 %v2024_v1  ;;  %v2058_v1 = vld [vmem:[%s2506_s7 + $0x8] sm:$0xff]  }
  0x73   :  { %544 = vmatpush2.bf16.msra.mxu0 %v2026_v2  ;;  %v2059_v2 = vld [vmem:[%s2506_s7] sm:$0xff]  }
  0x74   :  { %585 = vmatpush2.bf16.msra.mxu1 %v2027_v3  ;;  %1850 = vmatprep.subr.bf16.mxu0 %v2032_v4  ;;  %v2060_v3 = vld [vmem:[#allocation7 + $0x70] ss:$8 sps:$4 sm:$0xff]   ;;  %v2062_v4 = vld [vmem:[#allocation7 + $0x74] ss:$8 sps:$4 sm:$0xff]  }
  0x75   :  { %1886 = vmatprep.subr.bf16.mxu1 %v2320_v23 }
  0x76   :  { %546 = vmatmul.mubr.bf16.vlgmr.msra.gmra.mxu0 %v1666_v6  ;;  %v2063_v6 = vld [vmem:[#allocation7 + $0x60] ss:$8 sps:$4 sm:$0xff]  }
  0x77   :  { %587 = vmatmul.mubr.bf16.vlgmr.msra.gmra.mxu1 %v1668_v7  ;;  %1851 = vmatpush3.bf16.msra.mxu0 %v2033_v5  ;;  %v2065_v5 = vld [vmem:[#allocation7 + $0x64] ss:$8 sps:$4 sm:$0xff]   ;;  %v2068_v7 = vld [vmem:[#allocation7 + $0x54] ss:$8 sps:$4 sm:$0xff]  }
  0x78   :  { %1852 = vmatprep.subr.bf16.mxu0 %v2034_v8  ;;  %1887 = vmatpush3.bf16.msra.mxu1 %v2048_v22  ;;  %v2066_v8 = vld [vmem:[#allocation7 + $0x50] ss:$8 sps:$4 sm:$0xff]   ;;  %v2075_v22 = vld [vmem:[#allocation7 + $0x20] ss:$8 sps:$4 sm:$0xff]  }
  0x79   :  { %1888 = vmatprep.subr.bf16.mxu1 %v2320_v23  ;;  %1902 = vmatprep.mubr.msk.bf16.mxu1 %vm2321_vm0, %v2320_v23 }
  0x7b   :  { %1853 = vmatpush3.bf16.msra.mxu0 %v2035_v9  ;;  %v2071_v9 = vld [vmem:[#allocation7 + $0x44] ss:$8 sps:$4 sm:$0xff]  }
  0x7c   :  { %1854 = vmatprep.subr.bf16.mxu0 %v2036_v10  ;;  %1889 = vmatpush3.bf16.msra.mxu1 %v2049_v24  ;;  %v2069_v10 = vld [vmem:[#allocation7 + $0x40] ss:$8 sps:$4 sm:$0xff]   ;;  %v2078_v24 = vld [vmem:[#allocation7 + $0x10] ss:$8 sps:$4 sm:$0xff]  }
  0x7d   :  { %1890 = vmatprep.subr.bf16.mxu1 %v2320_v23 }
  0x7f   :  { %1855 = vmatpush3.bf16.msra.mxu0 %v2037_v11  ;;  %v1751_v11 = vld [vmem:[%s2505_s6] ss:$0 sm:$0xff] }
  0x80   :  { %1856 = vmatprep.subr.bf16.mxu0 %v2038_v12  ;;  %1891 = vmatpush3.bf16.msra.mxu1 %v2050_v48  ;;  %v2134_v48 = vld [vmem:[#allocation8 + $0x1e4] ss:$16 sps:$4 sm:$0xff]  }
  0x81   :  { %1892 = vmatprep.subr.bf16.mxu1 %v2320_v23 }
  0x83   :  { %1857 = vmatpush3.bf16.msra.mxu0 %v2039_v13 }
  0x84   :  { %1858 = vmatprep.subr.bf16.mxu0 %v2040_v14  ;;  %1893 = vmatpush3.bf16.msra.mxu1 %v2051_v49  ;;  %v2132_v49 = vld [vmem:[#allocation8 + $0x1e0] ss:$16 sps:$4 sm:$0xff]  }
  0x85   :  { %1894 = vmatprep.subr.bf16.mxu1 %v2320_v23 }
  0x87   :  { %1859 = vmatpush3.bf16.msra.mxu0 %v2041_v15 }
  0x88   :  { %1860 = vmatprep.subr.bf16.mxu0 %v2042_v16  ;;  %1895 = vmatpush3.bf16.msra.mxu1 %v2052_v50  ;;  %v2140_v50 = vld [vmem:[#allocation8 + $0x1c4] ss:$16 sps:$4 sm:$0xff]  }
  0x89   :  { %1896 = vmatprep.subr.bf16.mxu1 %v2320_v23 }
  0x8b   :  { %1861 = vmatpush3.bf16.msra.mxu0 %v2043_v17 }
  0x8c   :  { %1862 = vmatprep.subr.bf16.mxu0 %v2044_v18  ;;  %1897 = vmatpush3.bf16.msra.mxu1 %v2053_v51  ;;  %v2138_v51 = vld [vmem:[#allocation8 + $0x1c0] ss:$16 sps:$4 sm:$0xff]  }
  0x8d   :  { %1898 = vmatprep.subr.bf16.mxu1 %v2320_v23 }
  0x8f   :  { %1863 = vmatpush3.bf16.msra.mxu0 %v2045_v19  ;;  %v2074_v19 = vld [vmem:[#allocation7 + $0x34] ss:$8 sps:$4 sm:$0xff]  }
  0x90   :  { %1864 = vmatprep.subr.bf16.mxu0 %v2046_v20  ;;  %1899 = vmatpush3.bf16.msra.mxu1 %v2054_v52  ;;  %v2072_v20 = vld [vmem:[#allocation7 + $0x30] ss:$8 sps:$4 sm:$0xff]   ;;  %v2146_v52 = vld [vmem:[#allocation8 + $0x1a4] ss:$16 sps:$4 sm:$0xff]  }
  0x91   :  { %1900 = vmatprep.subr.bf16.mxu1 %v2320_v23 }
  0x93   :  { %1865 = vmatpush3.bf16.msra.mxu0 %v2047_v21  ;;  %v2077_v21 = vld [vmem:[#allocation7 + $0x24] ss:$8 sps:$4 sm:$0xff]  }
  0x94   :  { %1906 = vmatprep.subr.bf16.mxu0 %v2320_v23  ;;  %1901 = vmatpush3.bf16.msra.mxu1 %v2055_v53  ;;  %v2144_v53 = vld [vmem:[#allocation8 + $0x1a0] ss:$16 sps:$4 sm:$0xff]  }
  0x95   :  { %1082 = vmatprep.subr.bf16.mxu1 %v2062_v4  ;;  %v2105_v4 = vld [vmem:[#allocation8 + $0x88] ss:$16 sps:$4 sm:$0xff]  }
 0x136   :  { %v547_v32 = vpop.f32.mrf.mxu0 }
 0x137   :  { %v588_v33 = vpop.f32.mrf.mxu1  ;;  %v548_v34 = vadd.f32 %v547_v32, %v172_v30  ;;  %v2322_v30 = vmov 0   ;;  %v2086_v32 = vld [vmem:[#allocation8 + $0xe4] ss:$16 sps:$4 sm:$0xff]  }
 0x138   :  { %v549_v35 = vpop.f32.mrf.mxu0 }
 0x139   :  { %v590_v36 = vpop.f32.mrf.mxu1  ;;  %v589_v37 = vadd.f32 %v588_v33, %v548_v34  ;;  %v550_v38 = vadd.f32 %v549_v35, %v176_v31  ;;  %v2084_v31 = vld [vmem:[#allocation8 + $0xe0] ss:$16 sps:$4 sm:$0xff]   ;;  %v2089_v33 = vld [vmem:[#allocation8 + $0xec] ss:$16 sps:$4 sm:$0xff]   ;;  %v2092_v34 = vld [vmem:[#allocation8 + $0xc4] ss:$16 sps:$4 sm:$0xff]  }
 0x13a   :  { %v551_v39 = vpop.f32.mrf.mxu0  ;;  %v2090_v35 = vld [vmem:[#allocation8 + $0xc0] ss:$16 sps:$4 sm:$0xff]  }
 0x13b   :  { %v592_v40 = vpop.f32.mrf.mxu1  ;;  %v591_v41 = vadd.f32 %v590_v36, %v550_v38  ;;  %2180 = vtanh.f32 %v589_v37  ;;  %v2098_v36 = vld [vmem:[#allocation8 + $0xa4] ss:$16 sps:$4 sm:$0xff]   ;;  %v2096_v37 = vld [vmem:[#allocation8 + $0xa0] ss:$16 sps:$4 sm:$0xff]  }
 0x13c   :  { %v552_v42 = vpop.f32.mrf.mxu0  ;;  %v2104_v38 = vld [vmem:[#allocation8 + $0x84] ss:$16 sps:$4 sm:$0xff]   ;;  %v2102_v39 = vld [vmem:[#allocation8 + $0x80] ss:$16 sps:$4 sm:$0xff]  }
 0x13d   :  { %v593_v43 = vpop.f32.mrf.mxu1  ;;  %2182 = vtanh.f32 %v591_v41  ;;  %v2110_v40 = vld [vmem:[#allocation8 + $0x64] ss:$16 sps:$4 sm:$0xff]   ;;  %v2108_v41 = vld [vmem:[#allocation8 + $0x60] ss:$16 sps:$4 sm:$0xff]  }
 0x13e   :  { %v2116_v42 = vld [vmem:[#allocation8 + $0x44] ss:$16 sps:$4 sm:$0xff]   ;;  %v2114_v43 = vld [vmem:[#allocation8 + $0x40] ss:$16 sps:$4 sm:$0xff]  }
 0x148   :  { %v2181_v44 = vpop.eup %2180 }
 0x149   :  { %v597_v47 = vpack.c.bf16 %v2181_v44, %v2181_v44  ;;  %v2122_v44 = vld [vmem:[#allocation8 + $0x24] ss:$16 sps:$4 sm:$0xff]  }
 0x14a   :  { %v2183_v45 = vpop.eup %2182 }
 0x14b   :  { %v598_v46 = vpack.c.bf16 %v2183_v45, %v2183_v45  ;;  %v2120_v45 = vld [vmem:[#allocation8 + $0x20] ss:$16 sps:$4 sm:$0xff]  }
 0x14d   :  { %766 = vmatprep.mubr.bf16.mxu0 %v598_v46  ;;  %v2128_v46 = vld [vmem:[#allocation8 + $0x4] ss:$16 sps:$4 sm:$0xff]  }
 0x14e   :  { %767 = vmatmul.mubr.bf16.vlgmr.msra.gmra.mxu0 %v597_v47  ;;  %v2126_v47 = vld [vmem:[#allocation8] ss:$16 sps:$4 sm:$0xff]  }
 0x14f   :  { %1914 = vmatprep.mubr.msk.bf16.mxu0 %vm2321_vm0, %v2320_v23  ;;  %1907 = vmatpush3.bf16.msra.mxu0 %v2056_v63  ;;  %v2095_v63 = vld [vmem:[#allocation8 + $0xcc] ss:$16 sps:$4 sm:$0xff]  }
 0x150   :  { %1908 = vmatprep.subr.bf16.mxu0 %v2320_v23 }
 0x153   :  { %1909 = vmatpush3.bf16.msra.mxu0 %v2057_v0  ;;  %v2093_v0 = vld [vmem:[#allocation8 + $0xc8] ss:$16 sps:$4 sm:$0xff]  }
 0x154   :  { %1910 = vmatprep.subr.bf16.mxu0 %v2320_v23 }
 0x157   :  { %1911 = vmatpush3.bf16.msra.mxu0 %v2058_v1  ;;  %v2101_v1 = vld [vmem:[#allocation8 + $0xac] ss:$16 sps:$4 sm:$0xff]  }
 0x158   :  { %1912 = vmatprep.subr.bf16.mxu0 %v2320_v23  ;;  %v2080_v23 = vld [vmem:[#allocation7 + $0x14] ss:$8 sps:$4 sm:$0xff]  }
 0x15b   :  { %1913 = vmatpush3.bf16.msra.mxu0 %v2059_v2  ;;  %v2099_v2 = vld [vmem:[#allocation8 + $0xa8] ss:$16 sps:$4 sm:$0xff]  }
 0x15c   :  { %1533 = vmatprep.subr.bf16.mxu0 %v2086_v32  ;;  %v2162_v32 = vld [vmem:[#allocation8 + $0x140] ss:$16 sps:$4 sm:$0xff]  }
 0x20e   :  { %v1866_v54 = vpop.f32.mrf.mxu0 }
 0x210   :  { %v1867_v56 = vpop.f32.mrf.mxu0 }
 0x211   :  { %v1868_v57 = vadd.f32 %v1867_v56, %v1866_v54  ;;  %v1760_v54 = vld [vmem:[%s2507_s8] ss:$0 sm:$0xff] }
 0x212   :  { %v1869_v58 = vpop.f32.mrf.mxu0 }
 0x213   :  { %v769_v59 = vadd.f32 %v1868_v57, %v1734_v55 }
 0x214   :  { %v1870_v60 = vpop.f32.mrf.mxu0 }
 0x215   :  { %2184 = vtanh.f32 %v769_v59 }
 0x222   :  { %v2185_v61 = vpop.eup %2184 }
 0x223   :  { %v775_v62 = vpack.c.bf16 %v2185_v61, %v2185_v61  ;;  %v2087_v61 = vld [vmem:[#allocation8 + $0xe8] ss:$16 sps:$4 sm:$0xff]  }
 0x225   :  { %1903 = vmatmul.mubr.bf16.vlgmr.msra.gmra.mxu1 %v775_v62 }
 0x226   :  { %1083 = vmatpush1.bf16.msra.mxu1 %v2060_v3  ;;  %1114 = vmatprep.mubr.bf16.mxu1 %v2322_v30  ;;  %v2107_v3 = vld [vmem:[#allocation8 + $0x8c] ss:$16 sps:$4 sm:$0xff]   ;;  %v2164_v30 = vld [vmem:[#allocation8 + $0x144] ss:$16 sps:$4 sm:$0xff]  }
 0x227   :  { %1084 = vmatprep.subr.bf16.mxu1 %v2065_v5  ;;  %v2113_v5 = vld [vmem:[#allocation8 + $0x6c] ss:$16 sps:$4 sm:$0xff]  }
 0x22a   :  { %1085 = vmatpush1.bf16.msra.mxu1 %v2063_v6  ;;  %v2111_v6 = vld [vmem:[#allocation8 + $0x68] ss:$16 sps:$4 sm:$0xff]  }
 0x22b   :  { %1086 = vmatprep.subr.bf16.mxu1 %v2068_v7  ;;  %v2119_v7 = vld [vmem:[#allocation8 + $0x4c] ss:$16 sps:$4 sm:$0xff]  }
 0x22e   :  { %1087 = vmatpush1.bf16.msra.mxu1 %v2066_v8  ;;  %v2117_v8 = vld [vmem:[#allocation8 + $0x48] ss:$16 sps:$4 sm:$0xff]  }
 0x22f   :  { %1088 = vmatprep.subr.bf16.mxu1 %v2071_v9  ;;  %v2125_v9 = vld [vmem:[#allocation8 + $0x2c] ss:$16 sps:$4 sm:$0xff]  }
 0x232   :  { %1089 = vmatpush1.bf16.msra.mxu1 %v2069_v10  ;;  %v2123_v10 = vld [vmem:[#allocation8 + $0x28] ss:$16 sps:$4 sm:$0xff]  }
 0x233   :  { %1090 = vmatprep.subr.bf16.mxu1 %v2074_v19  ;;  %v2152_v19 = vld [vmem:[#allocation8 + $0x184] ss:$16 sps:$4 sm:$0xff]  }
 0x236   :  { %1091 = vmatpush1.bf16.msra.mxu1 %v2072_v20  ;;  %v2155_v20 = vld [vmem:[#allocation8 + $0x18c] ss:$16 sps:$4 sm:$0xff]  }
 0x237   :  { %1092 = vmatprep.subr.bf16.mxu1 %v2077_v21  ;;  %v2150_v21 = vld [vmem:[#allocation8 + $0x180] ss:$16 sps:$4 sm:$0xff]  }
 0x23a   :  { %1093 = vmatpush1.bf16.msra.mxu1 %v2075_v22  ;;  %v2153_v22 = vld [vmem:[#allocation8 + $0x188] ss:$16 sps:$4 sm:$0xff]  }
 0x23b   :  { %1094 = vmatprep.subr.bf16.mxu1 %v2080_v23  ;;  %v2158_v23 = vld [vmem:[#allocation8 + $0x164] ss:$16 sps:$4 sm:$0xff]  }
 0x23e   :  { %1095 = vmatpush1.bf16.msra.mxu1 %v2078_v24  ;;  %v2161_v24 = vld [vmem:[#allocation8 + $0x16c] ss:$16 sps:$4 sm:$0xff]  }
 0x23f   :  { %1096 = vmatprep.subr.bf16.mxu1 %v2083_v25  ;;  %v2156_v25 = vld [vmem:[#allocation8 + $0x160] ss:$16 sps:$4 sm:$0xff]  }
 0x242   :  { %1097 = vmatpush1.bf16.msra.mxu1 %v2081_v28  ;;  %v2159_v28 = vld [vmem:[#allocation8 + $0x168] ss:$16 sps:$4 sm:$0xff]  }
 0x243   :  { %1574 = vmatprep.subr.bf16.mxu1 %v2089_v33  ;;  %v2165_v33 = vld [vmem:[#allocation8 + $0x148] ss:$16 sps:$4 sm:$0xff]  }
 0x2e5   :  { %v881_v12 = vpop.f32.mrf.mxu1 }
 0x2e6   :  { %v882_v13 = vadd.f32 %v1751_v11, %v881_v12  ;;  %v2131_v11 = vld [vmem:[#allocation8 + $0xc] ss:$16 sps:$4 sm:$0xff]   ;;  %v2129_v12 = vld [vmem:[#allocation8 + $0x8] ss:$16 sps:$4 sm:$0xff]  }
 0x2e7   :  { %v1904_v14 = vpop.f32.mrf.mxu1 }
 0x2e8   :  { %2186 = vtanh.f32 %v882_v13  ;;  %v2137_v13 = vld [vmem:[#allocation8 + $0x1ec] ss:$16 sps:$4 sm:$0xff]   ;;  %v2135_v14 = vld [vmem:[#allocation8 + $0x1e8] ss:$16 sps:$4 sm:$0xff]  }
 0x2e9   :  { %v884_v15 = vpop.f32.mrf.mxu1 }
 0x2ea   :  { %v2143_v15 = vld [vmem:[#allocation8 + $0x1cc] ss:$16 sps:$4 sm:$0xff]  }
 0x2eb   :  { %v1905_v16 = vpop.f32.mrf.mxu1 }
 0x2ec   :  { %v2141_v16 = vld [vmem:[#allocation8 + $0x1c8] ss:$16 sps:$4 sm:$0xff]  }
 0x2f5   :  { %v2187_v17 = vpop.eup %2186 }
 0x2f6   :  { %v888_v18 = vpack.c.bf16 %v2187_v17, %v2187_v17  ;;  %v2149_v17 = vld [vmem:[#allocation8 + $0x1ac] ss:$16 sps:$4 sm:$0xff]  }
 0x2f8   :  { %1915 = vmatmul.mubr.msk.bf16.vlgmr.msra.gmra.mxu0 %vm928_vm1, %v888_v18  ;;  %v2147_v18 = vld [vmem:[#allocation8 + $0x1a8] ss:$16 sps:$4 sm:$0xff]  }
 0x2f9   :  { %1534 = vmatpush1.bf16.msra.mxu0 %v2084_v31  ;;  %v2167_v31 = vld [vmem:[#allocation8 + $0x14c] ss:$16 sps:$4 sm:$0xff]  }
 0x2fa   :  { %1535 = vmatprep.subr.bf16.mxu0 %v2092_v34  ;;  %v2170_v34 = vld [vmem:[#allocation8 + $0x124] ss:$16 sps:$4 sm:$0xff]  }
 0x2fd   :  { %1536 = vmatpush1.bf16.msra.mxu0 %v2090_v35  ;;  %v2173_v35 = vld [vmem:[#allocation8 + $0x12c] ss:$16 sps:$4 sm:$0xff]  }
 0x2fe   :  { %1537 = vmatprep.subr.bf16.mxu0 %v2098_v36  ;;  %v2168_v36 = vld [vmem:[#allocation8 + $0x120] ss:$16 sps:$4 sm:$0xff]  }
 0x301   :  { %1538 = vmatpush1.bf16.msra.mxu0 %v2096_v37  ;;  %v2171_v37 = vld [vmem:[#allocation8 + $0x128] ss:$16 sps:$4 sm:$0xff]  }
 0x302   :  { %1539 = vmatprep.subr.bf16.mxu0 %v2104_v38  ;;  %v2176_v38 = vld [vmem:[#allocation8 + $0x104] ss:$16 sps:$4 sm:$0xff]  }
 0x305   :  { %1540 = vmatpush1.bf16.msra.mxu0 %v2102_v39  ;;  %v2179_v39 = vld [vmem:[#allocation8 + $0x10c] ss:$16 sps:$4 sm:$0xff]  }
 0x306   :  { %1541 = vmatprep.subr.bf16.mxu0 %v2110_v40  ;;  %v2174_v40 = vld [vmem:[#allocation8 + $0x100] ss:$16 sps:$4 sm:$0xff]  }
 0x309   :  { %1542 = vmatpush1.bf16.msra.mxu0 %v2108_v41  ;;  %v2177_v41 = vld [vmem:[#allocation8 + $0x108] ss:$16 sps:$4 sm:$0xff]  }
 0x30a   :  { %1543 = vmatprep.subr.bf16.mxu0 %v2116_v42  ;;  %v990_v42 = vld [vmem:[%s2509_s10] sm:$0x3] }
 0x30d   :  { %1544 = vmatpush1.bf16.msra.mxu0 %v2114_v43  ;;  %v995_v43 = vrot.slane %v990_v42, %v2425_v27 }
 0x30e   :  { %1545 = vmatprep.subr.bf16.mxu0 %v2122_v44  ;;  %v999_v44 = vrot.slane %v990_v42, %v2431_v29 }
 0x311   :  { %1546 = vmatpush1.bf16.msra.mxu0 %v2120_v45 }
 0x312   :  { %1547 = vmatprep.subr.bf16.mxu0 %v2128_v46 }
 0x315   :  { %1548 = vmatpush1.bf16.msra.mxu0 %v2126_v47 }
 0x316   :  { %1549 = vmatprep.subr.bf16.mxu0 %v2134_v48 }
 0x319   :  { %1550 = vmatpush2.bf16.msra.mxu0 %v2132_v49 }
 0x31a   :  { %1551 = vmatprep.subr.bf16.mxu0 %v2140_v50 }
 0x31d   :  { %1552 = vmatpush2.bf16.msra.mxu0 %v2138_v51 }
 0x31e   :  { %1553 = vmatprep.subr.bf16.mxu0 %v2146_v52 }
 0x321   :  { %1554 = vmatpush2.bf16.msra.mxu0 %v2144_v53 }
 0x322   :  { %1555 = vmatprep.subr.bf16.mxu0 %v2152_v19 }
 0x325   :  { %1556 = vmatpush2.bf16.msra.mxu0 %v2150_v21 }
 0x326   :  { %1557 = vmatprep.subr.bf16.mxu0 %v2158_v23 }
 0x329   :  { %1558 = vmatpush2.bf16.msra.mxu0 %v2156_v25 }
 0x32a   :  { %1559 = vmatprep.subr.bf16.mxu0 %v2164_v30 }
 0x32d   :  { %1560 = vmatpush2.bf16.msra.mxu0 %v2162_v32 }
 0x32e   :  { %1561 = vmatprep.subr.bf16.mxu0 %v2170_v34 }
 0x331   :  { %1562 = vmatpush2.bf16.msra.mxu0 %v2168_v36 }
 0x332   :  { %1563 = vmatprep.subr.bf16.mxu0 %v2176_v38 }
 0x335   :  { %1564 = vmatpush2.bf16.msra.mxu0 %v2174_v40 }
 0x3b8   :  { %v966_v55 = vpop.f32.mrf.mxu0 }
 0x3b9   :  { %v967_v56 = vadd.f32 %v1760_v54, %v966_v55  ;;  %v1203_v55 = vsub.s32 2, %v2422_v26 }
 0x3ba   :  { %v1916_v57 = vpop.f32.mrf.mxu0 }
 0x3bb   :  { %2188 = vtanh.f32 %v967_v56  ;;  %v1191_v56 = vld [vmem:[%s2511_s12] sm:$0xf]  ;;  %v1207_v57 = vsub.s32 3, %v2422_v26  ;;  %s2323_s12 = smov [#allocation10]  }
 0x3bc   :  { %v969_v58 = vpop.f32.mrf.mxu0  ;;  %s1655_s22 = sshll.u32 %s2323_s12, 4  ;;  %s1656_s22 = int_to_ptr.vmem [resolvable:$true] %s1655_s22 }
 0x3bd   :  { %v1196_v58 = vrot.slane %v1191_v56, %v2425_v27  ;;  %s2282_s23 = scalar_lea.vmem %s1656_s22, 256  ;;  %p2287_p7 = scmp.lt.s32.totalorder %s1656_s22, %s1656_s22 }
 0x3be   :  { %v1917_v59 = vpop.f32.mrf.mxu0  ;;  %p2283_p6 = scmp.ne.s32.totalorder %s1656_s22, %s2282_s23  ;;  %p2288_p8 = scmp.lt.s32.totalorder %s2282_s23, %s2282_s23 }
 0x3bf   :  { %v1204_v59 = vrot.slane %v1191_v56, %v1203_v55 }
 0x3c0   :  { %p2289_p9 = por %p2288_p8, %p2287_p7 }
 0x3c2   :  { %p2290_p10 = pnand %p2289_p9, %p2283_p6 }
 0x3c8   :  { %v2189_v60 = vpop.eup %2188 }
 0x3c9   :  { %v973_v62 = vpack.c.bf16 %v2189_v60, %v2189_v60  ;;  %v1200_v60 = vrot.slane %v1191_v56, %v2431_v29 }
 0x3cb   :  { %1115 = vmatmul.mubr.bf16.vlgmr.msra.gmra.mxu1 %v973_v62 }
 0x3cc   :  { %1575 = vmatpush1.bf16.msra.mxu1 %v2087_v61  ;;  %v1208_v61 = vrot.slane %v1191_v56, %v1207_v57 }
 0x3cd   :  { %1576 = vmatprep.subr.bf16.mxu1 %v2095_v63 }
 0x3d0   :  { %1577 = vmatpush1.bf16.msra.mxu1 %v2093_v0 }
 0x3d1   :  { %1578 = vmatprep.subr.bf16.mxu1 %v2101_v1 }
 0x3d4   :  { %1579 = vmatpush1.bf16.msra.mxu1 %v2099_v2 }
 0x3d5   :  { %1580 = vmatprep.subr.bf16.mxu1 %v2107_v3 }
 0x3d8   :  { %1581 = vmatpush1.bf16.msra.mxu1 %v2105_v4 }
 0x3d9   :  { %1582 = vmatprep.subr.bf16.mxu1 %v2113_v5 }
 0x3dc   :  { %1583 = vmatpush1.bf16.msra.mxu1 %v2111_v6 }
 0x3dd   :  { %1584 = vmatprep.subr.bf16.mxu1 %v2119_v7 }
 0x3e0   :  { %1585 = vmatpush1.bf16.msra.mxu1 %v2117_v8 }
 0x3e1   :  { %1586 = vmatprep.subr.bf16.mxu1 %v2125_v9 }
 0x3e4   :  { %1587 = vmatpush1.bf16.msra.mxu1 %v2123_v10 }
 0x3e5   :  { %1588 = vmatprep.subr.bf16.mxu1 %v2131_v11 }
 0x3e8   :  { %1589 = vmatpush1.bf16.msra.mxu1 %v2129_v12 }
 0x3e9   :  { %1590 = vmatprep.subr.bf16.mxu1 %v2137_v13 }
 0x3ec   :  { %1591 = vmatpush2.bf16.msra.mxu1 %v2135_v14 }
 0x3ed   :  { %1592 = vmatprep.subr.bf16.mxu1 %v2143_v15 }
 0x3f0   :  { %1593 = vmatpush2.bf16.msra.mxu1 %v2141_v16 }
 0x3f1   :  { %1594 = vmatprep.subr.bf16.mxu1 %v2149_v17 }
 0x3f4   :  { %1595 = vmatpush2.bf16.msra.mxu1 %v2147_v18 }
 0x3f5   :  { %1596 = vmatprep.subr.bf16.mxu1 %v2155_v20 }
 0x3f8   :  { %1597 = vmatpush2.bf16.msra.mxu1 %v2153_v22 }
 0x3f9   :  { %1598 = vmatprep.subr.bf16.mxu1 %v2161_v24 }
 0x3fc   :  { %1599 = vmatpush2.bf16.msra.mxu1 %v2159_v28 }
 0x3fd   :  { %1600 = vmatprep.subr.bf16.mxu1 %v2167_v31 }
 0x400   :  { %1601 = vmatpush2.bf16.msra.mxu1 %v2165_v33 }
 0x401   :  { %1602 = vmatprep.subr.bf16.mxu1 %v2173_v35 }
 0x404   :  { %1603 = vmatpush2.bf16.msra.mxu1 %v2171_v37 }
 0x405   :  { %1604 = vmatprep.subr.bf16.mxu1 %v2179_v39 }
 0x408   :  { %1605 = vmatpush2.bf16.msra.mxu1 %v2177_v41 }
 0x48b   :  { %v1116_v45 = vpop.f32.mrf.mxu1 }
 0x48c   :  { %v1117_v46 = vadd.f32 %v1116_v45, %v995_v43 }
 0x48d   :  { %v1118_v47 = vpop.f32.mrf.mxu1 }
 0x48e   :  { %v1119_v48 = vadd.f32 %v1118_v47, %v999_v44  ;;  %2190 = vtanh.f32 %v1117_v46 }
 0x48f   :  { %v1120_v49 = vpop.f32.mrf.mxu1 }
 0x490   :  { %2192 = vtanh.f32 %v1119_v48 }
 0x491   :  { %v1121_v50 = vpop.f32.mrf.mxu1 }
 0x49b   :  { %v2191_v51 = vpop.eup %2190 }
 0x49c   :  { %v1125_v54 = vpack.c.bf16 %v2191_v51, %v2191_v51 }
 0x49d   :  { %v2193_v52 = vpop.eup %2192 }
 0x49e   :  { %v1126_v53 = vpack.c.bf16 %v2193_v52, %v2193_v52 }
 0x4a0   :  { %1565 = vmatprep.mubr.bf16.mxu0 %v1126_v53  ;;  %1606 = vmatprep.mubr.bf16.mxu1 %v1126_v53 }
 0x4a1   :  { %1566 = vmatmul.mubr.bf16.vlgmr.msra.gmra.mxu0 %v1125_v54  ;;  %1607 = vmatmul.mubr.bf16.vlgmr.msra.gmra.mxu1 %v1125_v54 }
 0x561   :  { %v1567_v62 = vpop.f32.mrf.mxu0  ;;  %v1608_v63 = vpop.f32.mrf.mxu1 }
 0x562   :  { %v1568_v0 = vadd.f32 %v1567_v62, %v1196_v58  ;;  %v1609_v1 = vadd.f32 %v1608_v63, %v1204_v59 }
 0x563   :  { %v1569_v2 = vpop.f32.mrf.mxu0  ;;  %v1610_v3 = vpop.f32.mrf.mxu1 }
 0x564   :  { %v1615_v4 = vmul.f32 0.5, %v1568_v0  ;;  %v1617_v5 = vmul.f32 0.5, %v1609_v1  ;;  %v1570_v6 = vadd.f32 %v1569_v2, %v1200_v60  ;;  %v1611_v7 = vadd.f32 %v1610_v3, %v1208_v61 }
 0x565   :  { %v1571_v8 = vpop.f32.mrf.mxu0  ;;  %v1612_v9 = vpop.f32.mrf.mxu1 }
 0x566   :  { %2194 = vtanh.f32 %v1615_v4  ;;  %v1616_v26 = vmul.f32 0.5, %v1570_v6  ;;  %v1618_v10 = vmul.f32 0.5, %v1611_v7 }
 0x567   :  { %2196 = vtanh.f32 %v1617_v5  ;;  %v1572_v27 = vpop.f32.mrf.mxu0  ;;  %v1613_v11 = vpop.f32.mrf.mxu1 }
 0x568   :  { %2198 = vtanh.f32 %v1616_v26 }
 0x569   :  { %2200 = vtanh.f32 %v1618_v10 }
 0x573   :  { %v2195_v29 = vpop.eup %2194 }
 0x574   :  { %v2197_v12 = vpop.eup %2196  ;;  %v1623_v13 = vmul.f32 0.5, %v2195_v29 }
 0x575   :  { %v2199_v14 = vpop.eup %2198  ;;  %v1625_v15 = vmul.f32 0.5, %v2197_v12 }
 0x576   :  { %v2201_v16 = vpop.eup %2200  ;;  %v1624_v17 = vmul.f32 0.5, %v2199_v14  ;;  %v1627_v19 = vadd.f32 0.5, %v1623_v13 }
 0x577   :  { %v1626_v18 = vmul.f32 0.5, %v2201_v16  ;;  %v1629_v21 = vadd.f32 0.5, %v1625_v15 }
 0x578   :  { %v1628_v20 = vadd.f32 0.5, %v1624_v17 }
 0x579   :  { %v1630_v22 = vadd.f32 0.5, %v1626_v18 }
 0x57a   :  { %v1848_v23 = vpack.c.bf16 %v1628_v20, %v1627_v19 }
 0x57b   :  { %v1849_v24 = vpack.c.bf16 %v1630_v22, %v1629_v21 }
 0x57c   :  { %1647 = vst [vmem:[#allocation10] sm:$0xff] %v1848_v23 }
 0x57d   :  { %1648 = vst [vmem:[#allocation10 + $0x8] sm:$0xff] %v1849_v24 }
 0x57e   :  { %2293 = shalt.err (!%p2290_p10)
}
 0x57f   :  { %1658 = dma.vmem_to_hbm [thread:$0]  %s1656_s22, 256, %s2512_s13, [#allocation4]  }
 0x580   :  { %2308 = dma.done.wait [#allocation4], 256  }
 0x581   :  { %2309 = vsyncadd [#allocation4], 4294967040 }
 0x582   :  { %1662 = vsyncpa [#allocation3], 1 }
 0x583   :  { %1663 = vsyncpa [#allocation6], 1 }
 0x584   :  { %1664 = vsyncpa [#allocation9], 1 }
 0x585   :  { %1665 = vsyncpa [#allocation4], 1 }

// kernel: _ae_pallas.1
= control target key start
LH: loop header
LB: loop body
LE: loop exit
PB: predicated region body
PF: predicated region fallthrough
CT: control target
= control target key end

     0   :  { %18 = vsyncpa [#allocation3], 0  ;;  %s2499_s0 = inlined_call_operand.vmem [shape: bf16[8,512], index: 0, kind: input, shape index: {}]   ;;  %s2500_s1 = inlined_call_operand.hbm [shape: bf16[512,256], index: 1, kind: input, shape index: {}]   ;;  %s2501_s2 = inlined_call_operand.vmem [shape: f32[1,256], index: 2, kind: input, shape index: {}]   ;;  %s2502_s3 = inlined_call_operand.hbm [shape: bf16[256,128], index: 3, kind: input, shape index: {}]   ;;  %s2503_s4 = inlined_call_operand.vmem [shape: f32[1,128], index: 4, kind: input, shape index: {}]   ;;  %s2504_s5 = inlined_call_operand.vmem [shape: bf16[128,64], index: 5, kind: input, shape index: {}]   ;;  %s2505_s6 = inlined_call_operand.vmem [shape: f32[1,64], index: 6, kind: input, shape index: {}]   ;;  %s2506_s7 = inlined_call_operand.vmem [shape: bf16[64,128], index: 7, kind: input, shape index: {}]   ;;  %s2507_s8 = inlined_call_operand.vmem [shape: f32[1,128], index: 8, kind: input, shape index: {}]   ;;  %s2508_s9 = inlined_call_operand.hbm [shape: bf16[128,256], index: 9, kind: input, shape index: {}]   ;;  %s2509_s10 = inlined_call_operand.vmem [shape: f32[1,256], index: 10, kind: input, shape index: {}]   ;;  %s2510_s11 = inlined_call_operand.hbm [shape: bf16[256,512], index: 11, kind: input, shape index: {}]   ;;  %s2511_s12 = inlined_call_operand.vmem [shape: f32[1,512], index: 12, kind: input, shape index: {}]   ;;  %s2512_s13 = inlined_call_operand.hbm [shape: bf16[8,512], index: 13, kind: output, shape index: {}]  }
   0x1   :  { %19 = vsyncpa [#allocation6], 0 }
   0x2   :  { %20 = vsyncpa [#allocation9], 0 }
   0x3   :  { %21 = vsyncpa [#allocation4], 0  ;;  %s2310_s25 = smov [#allocation5]  }
   0x4   :  { %s43_s26 = sshll.u32 %s2310_s25, 4  ;;  %s44_s26 = int_to_ptr.vmem [resolvable:$true] %s43_s26 }
   0x5   :  { %s2210_s27 = scalar_lea.vmem %s44_s26, 2048  ;;  %p2215_p1 = scmp.lt.s32.totalorder %s44_s26, %s44_s26 }
   0x6   :  { %p2211_p0 = scmp.ne.s32.totalorder %s44_s26, %s2210_s27  ;;  %p2216_p2 = scmp.lt.s32.totalorder %s2210_s27, %s2210_s27 }
   0x8   :  { %p2217_p3 = por %p2216_p2, %p2215_p1 }
   0xa   :  { %p2218_p4 = pnand %p2217_p3, %p2211_p0 }
   0xc   :  { %2221 = shalt.err (!%p2218_p4)
}
   0xd   :  { %s2311_s28 = smov 64   ;;  %s2312_s29 = smov 4  }
   0xe   :  { %49 = dma.hbm_to_vmem [thread:$0]  %s2502_s3, 2048, %s44_s26, [#allocation6], %s2311_s28, %s2311_s28, %s2312_s29  }
   0xf   :  { %s2313_s15 = smov [#allocation2]  }
  0x10   :  { %s29_s16 = sshll.u32 %s2313_s15, 4  ;;  %s30_s16 = int_to_ptr.vmem [resolvable:$true] %s29_s16 }
  0x11   :  { %s2230_s17 = scalar_lea.vmem %s30_s16, 8192  ;;  %p2235_p6 = scmp.lt.s32.totalorder %s30_s16, %s30_s16 }
  0x12   :  { %p2231_p5 = scmp.ne.s32.totalorder %s30_s16, %s2230_s17  ;;  %p2236_p7 = scmp.lt.s32.totalorder %s2230_s17, %s2230_s17 }
  0x14   :  { %p2237_p8 = por %p2236_p7, %p2235_p6 }
  0x16   :  { %p2238_p9 = pnand %p2237_p8, %p2231_p5 }
  0x18   :  { %2241 = shalt.err (!%p2238_p9)
}
  0x19   :  { %s2314_s18 = smov 128   ;;  %s2315_s19 = smov 8  }
  0x1a   :  { %35 = dma.hbm_to_vmem [thread:$0]  %s2500_s1, 8192, %s30_s16, [#allocation3], %s2314_s18, %s2314_s18, %s2315_s19  }
  0x1b   :  { %s2316_s22 = smov [#allocation7]   ;;  %s2317_s24 = smov [#allocation8]  }
  0x1c   :  { %s65_s23 = sshll.u32 %s2316_s22, 4  ;;  %s79_s3 = sshll.u32 %s2317_s24, 4  ;;  %s66_s23 = int_to_ptr.vmem [resolvable:$true] %s65_s23  ;;  %s80_s3 = int_to_ptr.vmem [resolvable:$true] %s79_s3 }
  0x1d   :  { %s2250_s25 = scalar_lea.vmem %s66_s23, 2048  ;;  %p2255_p11 = scmp.lt.s32.totalorder %s66_s23, %s66_s23 }
  0x1e   :  { %p2251_p10 = scmp.ne.s32.totalorder %s66_s23, %s2250_s25  ;;  %p2256_p12 = scmp.lt.s32.totalorder %s2250_s25, %s2250_s25 }
  0x20   :  { %p2257_p13 = por %p2256_p12, %p2255_p11 }
  0x22   :  { %p2258_p0 = pnand %p2257_p13, %p2251_p10 }
  0x24   :  { %2261 = shalt.err (!%p2258_p0)
}
  0x25   :  { %71 = dma.hbm_to_vmem [thread:$0]  %s2508_s9, 2048, %s66_s23, [#allocation6], %s2314_s18, %s2314_s18, %s2315_s19  }
  0x26   :  { %s2270_s28 = scalar_lea.vmem %s80_s3, 8192  ;;  %p2275_p2 = scmp.lt.s32.totalorder %s80_s3, %s80_s3 }
  0x27   :  { %p2271_p1 = scmp.ne.s32.totalorder %s80_s3, %s2270_s28  ;;  %p2276_p3 = scmp.lt.s32.totalorder %s2270_s28, %s2270_s28 }
  0x29   :  { %p2277_p4 = por %p2276_p3, %p2275_p2 }
  0x2b   :  { %p2278_p5 = pnand %p2277_p4, %p2271_p1 }
  0x2d   :  { %2281 = shalt.err (!%p2278_p5)
}
  0x2e   :  { %s2318_s1 = smov 256   ;;  %s2319_s29 = smov 16  }
  0x2f   :  { %85 = dma.hbm_to_vmem [thread:$0]  %s2510_s11, 8192, %s80_s3, [#allocation9], %s2318_s1, %s2318_s1, %s2319_s29  }
  0x30   :  { %2302 = dma.done.wait [#allocation3], 8192  }
  0x31   :  { %2303 = vsyncadd [#allocation3], 4294959104 }
  0x32   :  { %2304 = dma.done.wait [#allocation6], 4096  }
  0x33   :  { %2305 = vsyncadd [#allocation6], 4294963200 }
  0x34   :  { %2306 = dma.done.wait [#allocation9], 8192  }
  0x35   :  { %2307 = vsyncadd [#allocation9], 4294959104  ;;  %v1932_v0 = vld [vmem:[#allocation2 + $0x74] ss:$8 sps:$4 sm:$0xff]   ;;  %v1936_v2 = vld [vmem:[#allocation2 + $0x70] ss:$8 sps:$4 sm:$0xff]  }
  0x36   :  { %v1934_v1 = vld [vmem:[#allocation2 + $0x174] ss:$8 sps:$4 sm:$0xff]   ;;  %513 = vmatprep.subr.bf16.mxu0 %v1932_v0  ;;  %v1937_v3 = vld [vmem:[#allocation2 + $0x170] ss:$8 sps:$4 sm:$0xff]   ;;  %v1938_v4 = vld [vmem:[#allocation2 + $0x64] ss:$8 sps:$4 sm:$0xff]  }
  0x37   :  { %554 = vmatprep.subr.bf16.mxu1 %v1934_v1  ;;  %514 = vmatpush1.bf16.msra.mxu0 %v1936_v2  ;;  %v1940_v5 = vld [vmem:[#allocation2 + $0x164] ss:$8 sps:$4 sm:$0xff]   ;;  %v1942_v6 = vld [vmem:[#allocation2 + $0x60] ss:$8 sps:$4 sm:$0xff]   ;;  %v1944_v8 = vld [vmem:[#allocation2 + $0x54] ss:$8 sps:$4 sm:$0xff]  }
  0x38   :  { %555 = vmatpush1.bf16.msra.mxu1 %v1937_v3  ;;  %515 = vmatprep.subr.bf16.mxu0 %v1938_v4  ;;  %v1943_v7 = vld [vmem:[#allocation2 + $0x160] ss:$8 sps:$4 sm:$0xff]   ;;  %v1946_v9 = vld [vmem:[#allocation2 + $0x154] ss:$8 sps:$4 sm:$0xff]   ;;  %v1948_v10 = vld [vmem:[#allocation2 + $0x50] ss:$8 sps:$4 sm:$0xff]  }
  0x39   :  { %556 = vmatprep.subr.bf16.mxu1 %v1940_v5  ;;  %v1949_v11 = vld [vmem:[#allocation2 + $0x150] ss:$8 sps:$4 sm:$0xff]   ;;  %v1950_v12 = vld [vmem:[#allocation2 + $0x44] ss:$8 sps:$4 sm:$0xff]   ;;  %v1954_v14 = vld [vmem:[#allocation2 + $0x40] ss:$8 sps:$4 sm:$0xff]  }
  0x3a   :  { %v1952_v13 = vld [vmem:[#allocation2 + $0x144] ss:$8 sps:$4 sm:$0xff]   ;;  %v1955_v15 = vld [vmem:[#allocation2 + $0x140] ss:$8 sps:$4 sm:$0xff]   ;;  %v1956_v16 = vld [vmem:[#allocation2 + $0x34] ss:$8 sps:$4 sm:$0xff]  }
  0x3b   :  { %516 = vmatpush1.bf16.msra.mxu0 %v1942_v6  ;;  %v1958_v17 = vld [vmem:[#allocation2 + $0x134] ss:$8 sps:$4 sm:$0xff]   ;;  %v1960_v18 = vld [vmem:[#allocation2 + $0x30] ss:$8 sps:$4 sm:$0xff]   ;;  %v1962_v20 = vld [vmem:[#allocation2 + $0x24] ss:$8 sps:$4 sm:$0xff]  }
  0x3c   :  { %557 = vmatpush1.bf16.msra.mxu1 %v1943_v7  ;;  %517 = vmatprep.subr.bf16.mxu0 %v1944_v8  ;;  %v1961_v19 = vld [vmem:[#allocation2 + $0x130] ss:$8 sps:$4 sm:$0xff]   ;;  %v1964_v21 = vld [vmem:[#allocation2 + $0x124] ss:$8 sps:$4 sm:$0xff]   ;;  %v1966_v22 = vld [vmem:[#allocation2 + $0x20] ss:$8 sps:$4 sm:$0xff]  }
  0x3d   :  { %558 = vmatprep.subr.bf16.mxu1 %v1946_v9  ;;  %v1967_v23 = vld [vmem:[#allocation2 + $0x120] ss:$8 sps:$4 sm:$0xff]   ;;  %v1968_v24 = vld [vmem:[#allocation2 + $0x14] ss:$8 sps:$4 sm:$0xff]   ;;  %v1972_v26 = vld [vmem:[#allocation2 + $0x10] ss:$8 sps:$4 sm:$0xff]  }
  0x3e   :  { %v1970_v25 = vld [vmem:[#allocation2 + $0x114] ss:$8 sps:$4 sm:$0xff]   ;;  %v1973_v27 = vld [vmem:[#allocation2 + $0x110] ss:$8 sps:$4 sm:$0xff]   ;;  %v1974_v28 = vld [vmem:[#allocation2 + $0x4] ss:$8 sps:$4 sm:$0xff]  }
  0x3f   :  { %518 = vmatpush1.bf16.msra.mxu0 %v1948_v10  ;;  %v1976_v29 = vld [vmem:[#allocation2 + $0x104] ss:$8 sps:$4 sm:$0xff]   ;;  %v1978_v30 = vld [vmem:[#allocation2] ss:$8 sps:$4 sm:$0xff]   ;;  %v1980_v32 = vld [vmem:[#allocation2 + $0xf4] ss:$8 sps:$4 sm:$0xff]  }
  0x40   :  { %559 = vmatpush1.bf16.msra.mxu1 %v1949_v11  ;;  %519 = vmatprep.subr.bf16.mxu0 %v1950_v12  ;;  %v1979_v31 = vld [vmem:[#allocation2 + $0x100] ss:$8 sps:$4 sm:$0xff]   ;;  %v1982_v33 = vld [vmem:[#allocation2 + $0x1f4] ss:$8 sps:$4 sm:$0xff]   ;;  %v1984_v34 = vld [vmem:[#allocation2 + $0xf0] ss:$8 sps:$4 sm:$0xff]  }
  0x41   :  { %560 = vmatprep.subr.bf16.mxu1 %v1952_v13  ;;  %v1985_v35 = vld [vmem:[#allocation2 + $0x1f0] ss:$8 sps:$4 sm:$0xff]   ;;  %v1986_v36 = vld [vmem:[#allocation2 + $0xe4] ss:$8 sps:$4 sm:$0xff]   ;;  %v1990_v38 = vld [vmem:[#allocation2 + $0xe0] ss:$8 sps:$4 sm:$0xff]  }
  0x42   :  { %v1988_v37 = vld [vmem:[#allocation2 + $0x1e4] ss:$8 sps:$4 sm:$0xff]   ;;  %v1991_v39 = vld [vmem:[#allocation2 + $0x1e0] ss:$8 sps:$4 sm:$0xff]   ;;  %v1992_v40 = vld [vmem:[#allocation2 + $0xd4] ss:$8 sps:$4 sm:$0xff]  }
  0x43   :  { %520 = vmatpush1.bf16.msra.mxu0 %v1954_v14  ;;  %v1994_v41 = vld [vmem:[#allocation2 + $0x1d4] ss:$8 sps:$4 sm:$0xff]   ;;  %v1996_v42 = vld [vmem:[#allocation2 + $0xd0] ss:$8 sps:$4 sm:$0xff]   ;;  %v1998_v44 = vld [vmem:[#allocation2 + $0xc4] ss:$8 sps:$4 sm:$0xff]  }
  0x44   :  { %561 = vmatpush1.bf16.msra.mxu1 %v1955_v15  ;;  %521 = vmatprep.subr.bf16.mxu0 %v1956_v16  ;;  %v1997_v43 = vld [vmem:[#allocation2 + $0x1d0] ss:$8 sps:$4 sm:$0xff]   ;;  %v2000_v45 = vld [vmem:[#allocation2 + $0x1c4] ss:$8 sps:$4 sm:$0xff]   ;;  %v2002_v46 = vld [vmem:[#allocation2 + $0xc0] ss:$8 sps:$4 sm:$0xff]  }
  0x45   :  { %562 = vmatprep.subr.bf16.mxu1 %v1958_v17  ;;  %v2003_v47 = vld [vmem:[#allocation2 + $0x1c0] ss:$8 sps:$4 sm:$0xff]   ;;  %v2004_v51 = vld [vmem:[#allocation2 + $0xb4] ss:$8 sps:$4 sm:$0xff]   ;;  %v2008_v54 = vld [vmem:[#allocation2 + $0xb0] ss:$8 sps:$4 sm:$0xff]  }
  0x46   :  { %v101_v48 = vld [vmem:[%s2499_s0] sm:$0xff]  ;;  %v102_v50 = vld [vmem:[%s2499_s0 + $0x8] sm:$0xff]  ;;  %v2006_v53 = vld [vmem:[#allocation2 + $0x1b4] ss:$8 sps:$4 sm:$0xff]   ;;  %vm2321_vm0 = vmmov 0   ;;  %vm928_vm1 = vcmask 523264  }
  0x47   :  { %522 = vmatpush1.bf16.msra.mxu0 %v1960_v18  ;;  %v1667_v49 = vcombine.high %v101_v48, %v101_v48  ;;  %v1669_v52 = vcombine.high %v102_v50, %v102_v50  ;;  %v2009_v55 = vld [vmem:[#allocation2 + $0x1b0] ss:$8 sps:$4 sm:$0xff]   ;;  %v2010_v56 = vld [vmem:[#allocation2 + $0xa4] ss:$8 sps:$4 sm:$0xff]   ;;  %v2014_v58 = vld [vmem:[#allocation2 + $0xa0] ss:$8 sps:$4 sm:$0xff]   ;;  %v1666_v6 = vcombine.low %v101_v48, %v101_v48  ;;  %v1668_v7 = vcombine.low %v102_v50, %v102_v50 }
  0x48   :  { %563 = vmatpush1.bf16.msra.mxu1 %v1961_v19  ;;  %523 = vmatprep.subr.bf16.mxu0 %v1962_v20  ;;  %v2012_v57 = vld [vmem:[#allocation2 + $0x1a4] ss:$8 sps:$4 sm:$0xff]   ;;  %v2015_v59 = vld [vmem:[#allocation2 + $0x1a0] ss:$8 sps:$4 sm:$0xff]   ;;  %v2016_v60 = vld [vmem:[#allocation2 + $0x94] ss:$8 sps:$4 sm:$0xff]  }
  0x49   :  { %564 = vmatprep.subr.bf16.mxu1 %v1964_v21  ;;  %545 = vmatprep.mubr.bf16.mxu0 %v1667_v49  ;;  %v2018_v61 = vld [vmem:[#allocation2 + $0x194] ss:$8 sps:$4 sm:$0xff]   ;;  %v2020_v62 = vld [vmem:[#allocation2 + $0x90] ss:$8 sps:$4 sm:$0xff]   ;;  %v2022_v0 = vld [vmem:[#allocation2 + $0x84] ss:$8 sps:$4 sm:$0xff]  }
  0x4a   :  { %586 = vmatprep.mubr.bf16.mxu1 %v1669_v52  ;;  %v2021_v63 = vld [vmem:[#allocation2 + $0x190] ss:$8 sps:$4 sm:$0xff]   ;;  %v2024_v1 = vld [vmem:[#allocation2 + $0x184] ss:$8 sps:$4 sm:$0xff]   ;;  %v2026_v2 = vld [vmem:[#allocation2 + $0x80] ss:$8 sps:$4 sm:$0xff]  }
  0x4b   :  { %524 = vmatpush1.bf16.msra.mxu0 %v1966_v22  ;;  %v2027_v3 = vld [vmem:[#allocation2 + $0x180] ss:$8 sps:$4 sm:$0xff]   ;;  %v2032_v4 = vld [vmem:[#allocation5 + $0x78] sm:$0xff]   ;;  %v2034_v8 = vld [vmem:[#allocation5 + $0x70] sm:$0xff]  }
  0x4c   :  { %565 = vmatpush1.bf16.msra.mxu1 %v1967_v23  ;;  %525 = vmatprep.subr.bf16.mxu0 %v1968_v24  ;;  %v2033_v5 = vld [vmem:[#allocation5 + $0x38] sm:$0xff]   ;;  %v2035_v9 = vld [vmem:[#allocation5 + $0x30] sm:$0xff]   ;;  %v2036_v10 = vld [vmem:[#allocation5 + $0x68] sm:$0xff]   ;;  %v2320_v23 = vmov 0.0  }
  0x4d   :  { %566 = vmatprep.subr.bf16.mxu1 %v1970_v25  ;;  %v2037_v11 = vld [vmem:[#allocation5 + $0x28] sm:$0xff]   ;;  %v2038_v12 = vld [vmem:[#allocation5 + $0x60] sm:$0xff]   ;;  %v2040_v14 = vld [vmem:[#allocation5 + $0x58] sm:$0xff]   ;;  %v169_v25 = vlaneseq }
  0x4e   :  { %v2039_v13 = vld [vmem:[#allocation5 + $0x20] sm:$0xff]   ;;  %v2041_v15 = vld [vmem:[#allocation5 + $0x18] sm:$0xff]   ;;  %v2042_v16 = vld [vmem:[#allocation5 + $0x50] sm:$0xff]  }
  0x4f   :  { %526 = vmatpush1.bf16.msra.mxu0 %v1972_v26  ;;  %v2043_v17 = vld [vmem:[#allocation5 + $0x10] sm:$0xff]   ;;  %v2044_v18 = vld [vmem:[#allocation5 + $0x48] sm:$0xff]   ;;  %v2046_v20 = vld [vmem:[#allocation5 + $0x40] sm:$0xff]   ;;  %v2422_v26 = vshrl.u32 %v169_v25, 7 }
  0x50   :  { %567 = vmatpush1.bf16.msra.mxu1 %v1973_v27  ;;  %527 = vmatprep.subr.bf16.mxu0 %v1974_v28  ;;  %v2045_v19 = vld [vmem:[#allocation5 + $0x8] sm:$0xff]   ;;  %v2047_v21 = vld [vmem:[#allocation5] sm:$0xff]   ;;  %v2048_v22 = vld [vmem:[%s2504_s5 + $0x38] sm:$0xff]  }
  0x51   :  { %568 = vmatprep.subr.bf16.mxu1 %v1976_v29  ;;  %v2049_v24 = vld [vmem:[%s2504_s5 + $0x30] sm:$0xff]   ;;  %v2425_v27 = vsub.s32 0, %v2422_v26  ;;  %v167_v28 = vld [vmem:[%s2501_s2] sm:$0x3]  ;;  %v2431_v29 = vsub.s32 1, %v2422_v26  ;;  %v2050_v48 = vld [vmem:[%s2504_s5 + $0x28] sm:$0xff]  }
  0x52   :  { %v2051_v49 = vld [vmem:[%s2504_s5 + $0x20] sm:$0xff]   ;;  %v2052_v50 = vld [vmem:[%s2504_s5 + $0x18] sm:$0xff]   ;;  %v2054_v52 = vld [vmem:[%s2504_s5 + $0x8] sm:$0xff]  }
  0x53   :  { %528 = vmatpush1.bf16.msra.mxu0 %v1978_v30  ;;  %v172_v30 = vrot.slane %v167_v28, %v2425_v27  ;;  %v2083_v25 = vld [vmem:[#allocation7 + $0x4] ss:$8 sps:$4 sm:$0xff]  }
  0x54   :  { %569 = vmatpush1.bf16.msra.mxu1 %v1979_v31  ;;  %529 = vmatprep.subr.bf16.mxu0 %v1980_v32  ;;  %v176_v31 = vrot.slane %v167_v28, %v2431_v29  ;;  %v2081_v28 = vld [vmem:[#allocation7] ss:$8 sps:$4 sm:$0xff]  }
  0x55   :  { %570 = vmatprep.subr.bf16.mxu1 %v1982_v33 }
  0x57   :  { %530 = vmatpush2.bf16.msra.mxu0 %v1984_v34 }
  0x58   :  { %571 = vmatpush2.bf16.msra.mxu1 %v1985_v35  ;;  %531 = vmatprep.subr.bf16.mxu0 %v1986_v36 }
  0x59   :  { %572 = vmatprep.subr.bf16.mxu1 %v1988_v37 }
  0x5b   :  { %532 = vmatpush2.bf16.msra.mxu0 %v1990_v38 }
  0x5c   :  { %573 = vmatpush2.bf16.msra.mxu1 %v1991_v39  ;;  %533 = vmatprep.subr.bf16.mxu0 %v1992_v40 }
  0x5d   :  { %574 = vmatprep.subr.bf16.mxu1 %v1994_v41 }
  0x5f   :  { %534 = vmatpush2.bf16.msra.mxu0 %v1996_v42 }
  0x60   :  { %575 = vmatpush2.bf16.msra.mxu1 %v1997_v43  ;;  %535 = vmatprep.subr.bf16.mxu0 %v1998_v44 }
  0x61   :  { %576 = vmatprep.subr.bf16.mxu1 %v2000_v45 }
  0x63   :  { %536 = vmatpush2.bf16.msra.mxu0 %v2002_v46 }
  0x64   :  { %577 = vmatpush2.bf16.msra.mxu1 %v2003_v47  ;;  %537 = vmatprep.subr.bf16.mxu0 %v2004_v51  ;;  %v2053_v51 = vld [vmem:[%s2504_s5 + $0x10] sm:$0xff]  }
  0x65   :  { %578 = vmatprep.subr.bf16.mxu1 %v2006_v53  ;;  %v2055_v53 = vld [vmem:[%s2504_s5] sm:$0xff]  }
  0x67   :  { %538 = vmatpush2.bf16.msra.mxu0 %v2008_v54 }
  0x68   :  { %579 = vmatpush2.bf16.msra.mxu1 %v2009_v55  ;;  %539 = vmatprep.subr.bf16.mxu0 %v2010_v56  ;;  %v1734_v55 = vld [vmem:[%s2503_s4] ss:$0 sm:$0xff] }
  0x69   :  { %580 = vmatprep.subr.bf16.mxu1 %v2012_v57 }
  0x6b   :  { %540 = vmatpush2.bf16.msra.mxu0 %v2014_v58 }
  0x6c   :  { %581 = vmatpush2.bf16.msra.mxu1 %v2015_v59  ;;  %541 = vmatprep.subr.bf16.mxu0 %v2016_v60 }
  0x6d   :  { %582 = vmatprep.subr.bf16.mxu1 %v2018_v61 }
  0x6f   :  { %542 = vmatpush2.bf16.msra.mxu0 %v2020_v62 }
  0x70   :  { %583 = vmatpush2.bf16.msra.mxu1 %v2021_v63  ;;  %543 = vmatprep.subr.bf16.mxu0 %v2022_v0  ;;  %v2056_v63 = vld [vmem:[%s2506_s7 + $0x18] sm:$0xff]   ;;  %v2057_v0 = vld [vmem:[%s2506_s7 + $0x10] sm:$0xff]  }
  0x71   :  { %584 = vmatprep.subr.bf16.mxu1 %v2024_v1  ;;  %v2058_v1 = vld [vmem:[%s2506_s7 + $0x8] sm:$0xff]  }
  0x73   :  { %544 = vmatpush2.bf16.msra.mxu0 %v2026_v2  ;;  %v2059_v2 = vld [vmem:[%s2506_s7] sm:$0xff]  }
  0x74   :  { %585 = vmatpush2.bf16.msra.mxu1 %v2027_v3  ;;  %1850 = vmatprep.subr.bf16.mxu0 %v2032_v4  ;;  %v2060_v3 = vld [vmem:[#allocation7 + $0x70] ss:$8 sps:$4 sm:$0xff]   ;;  %v2062_v4 = vld [vmem:[#allocation7 + $0x74] ss:$8 sps:$4 sm:$0xff]  }
  0x75   :  { %1886 = vmatprep.subr.bf16.mxu1 %v2320_v23 }
  0x76   :  { %546 = vmatmul.mubr.bf16.vlgmr.msra.gmra.mxu0 %v1666_v6  ;;  %v2063_v6 = vld [vmem:[#allocation7 + $0x60] ss:$8 sps:$4 sm:$0xff]  }
  0x77   :  { %587 = vmatmul.mubr.bf16.vlgmr.msra.gmra.mxu1 %v1668_v7  ;;  %1851 = vmatpush3.bf16.msra.mxu0 %v2033_v5  ;;  %v2065_v5 = vld [vmem:[#allocation7 + $0x64] ss:$8 sps:$4 sm:$0xff]   ;;  %v2068_v7 = vld [vmem:[#allocation7 + $0x54] ss:$8 sps:$4 sm:$0xff]  }
  0x78   :  { %1852 = vmatprep.subr.bf16.mxu0 %v2034_v8  ;;  %1887 = vmatpush3.bf16.msra.mxu1 %v2048_v22  ;;  %v2066_v8 = vld [vmem:[#allocation7 + $0x50] ss:$8 sps:$4 sm:$0xff]   ;;  %v2075_v22 = vld [vmem:[#allocation7 + $0x20] ss:$8 sps:$4 sm:$0xff]  }
  0x79   :  { %1888 = vmatprep.subr.bf16.mxu1 %v2320_v23  ;;  %1902 = vmatprep.mubr.msk.bf16.mxu1 %vm2321_vm0, %v2320_v23 }
  0x7b   :  { %1853 = vmatpush3.bf16.msra.mxu0 %v2035_v9  ;;  %v2071_v9 = vld [vmem:[#allocation7 + $0x44] ss:$8 sps:$4 sm:$0xff]  }
  0x7c   :  { %1854 = vmatprep.subr.bf16.mxu0 %v2036_v10  ;;  %1889 = vmatpush3.bf16.msra.mxu1 %v2049_v24  ;;  %v2069_v10 = vld [vmem:[#allocation7 + $0x40] ss:$8 sps:$4 sm:$0xff]   ;;  %v2078_v24 = vld [vmem:[#allocation7 + $0x10] ss:$8 sps:$4 sm:$0xff]  }
  0x7d   :  { %1890 = vmatprep.subr.bf16.mxu1 %v2320_v23 }
  0x7f   :  { %1855 = vmatpush3.bf16.msra.mxu0 %v2037_v11  ;;  %v1751_v11 = vld [vmem:[%s2505_s6] ss:$0 sm:$0xff] }
  0x80   :  { %1856 = vmatprep.subr.bf16.mxu0 %v2038_v12  ;;  %1891 = vmatpush3.bf16.msra.mxu1 %v2050_v48  ;;  %v2134_v48 = vld [vmem:[#allocation8 + $0x1e4] ss:$16 sps:$4 sm:$0xff]  }
  0x81   :  { %1892 = vmatprep.subr.bf16.mxu1 %v2320_v23 }
  0x83   :  { %1857 = vmatpush3.bf16.msra.mxu0 %v2039_v13 }
  0x84   :  { %1858 = vmatprep.subr.bf16.mxu0 %v2040_v14  ;;  %1893 = vmatpush3.bf16.msra.mxu1 %v2051_v49  ;;  %v2132_v49 = vld [vmem:[#allocation8 + $0x1e0] ss:$16 sps:$4 sm:$0xff]  }
  0x85   :  { %1894 = vmatprep.subr.bf16.mxu1 %v2320_v23 }
  0x87   :  { %1859 = vmatpush3.bf16.msra.mxu0 %v2041_v15 }
  0x88   :  { %1860 = vmatprep.subr.bf16.mxu0 %v2042_v16  ;;  %1895 = vmatpush3.bf16.msra.mxu1 %v2052_v50  ;;  %v2140_v50 = vld [vmem:[#allocation8 + $0x1c4] ss:$16 sps:$4 sm:$0xff]  }
  0x89   :  { %1896 = vmatprep.subr.bf16.mxu1 %v2320_v23 }
  0x8b   :  { %1861 = vmatpush3.bf16.msra.mxu0 %v2043_v17 }
  0x8c   :  { %1862 = vmatprep.subr.bf16.mxu0 %v2044_v18  ;;  %1897 = vmatpush3.bf16.msra.mxu1 %v2053_v51  ;;  %v2138_v51 = vld [vmem:[#allocation8 + $0x1c0] ss:$16 sps:$4 sm:$0xff]  }
  0x8d   :  { %1898 = vmatprep.subr.bf16.mxu1 %v2320_v23 }
  0x8f   :  { %1863 = vmatpush3.bf16.msra.mxu0 %v2045_v19  ;;  %v2074_v19 = vld [vmem:[#allocation7 + $0x34] ss:$8 sps:$4 sm:$0xff]  }
  0x90   :  { %1864 = vmatprep.subr.bf16.mxu0 %v2046_v20  ;;  %1899 = vmatpush3.bf16.msra.mxu1 %v2054_v52  ;;  %v2072_v20 = vld [vmem:[#allocation7 + $0x30] ss:$8 sps:$4 sm:$0xff]   ;;  %v2146_v52 = vld [vmem:[#allocation8 + $0x1a4] ss:$16 sps:$4 sm:$0xff]  }
  0x91   :  { %1900 = vmatprep.subr.bf16.mxu1 %v2320_v23 }
  0x93   :  { %1865 = vmatpush3.bf16.msra.mxu0 %v2047_v21  ;;  %v2077_v21 = vld [vmem:[#allocation7 + $0x24] ss:$8 sps:$4 sm:$0xff]  }
  0x94   :  { %1906 = vmatprep.subr.bf16.mxu0 %v2320_v23  ;;  %1901 = vmatpush3.bf16.msra.mxu1 %v2055_v53  ;;  %v2144_v53 = vld [vmem:[#allocation8 + $0x1a0] ss:$16 sps:$4 sm:$0xff]  }
  0x95   :  { %1082 = vmatprep.subr.bf16.mxu1 %v2062_v4  ;;  %v2105_v4 = vld [vmem:[#allocation8 + $0x88] ss:$16 sps:$4 sm:$0xff]  }
 0x136   :  { %v547_v32 = vpop.f32.mrf.mxu0 }
 0x137   :  { %v588_v33 = vpop.f32.mrf.mxu1  ;;  %v548_v34 = vadd.f32 %v547_v32, %v172_v30  ;;  %v2322_v30 = vmov 0   ;;  %v2086_v32 = vld [vmem:[#allocation8 + $0xe4] ss:$16 sps:$4 sm:$0xff]  }
 0x138   :  { %v549_v35 = vpop.f32.mrf.mxu0 }
 0x139   :  { %v590_v36 = vpop.f32.mrf.mxu1  ;;  %v589_v37 = vadd.f32 %v588_v33, %v548_v34  ;;  %v550_v38 = vadd.f32 %v549_v35, %v176_v31  ;;  %v2084_v31 = vld [vmem:[#allocation8 + $0xe0] ss:$16 sps:$4 sm:$0xff]   ;;  %v2089_v33 = vld [vmem:[#allocation8 + $0xec] ss:$16 sps:$4 sm:$0xff]   ;;  %v2092_v34 = vld [vmem:[#allocation8 + $0xc4] ss:$16 sps:$4 sm:$0xff]  }
 0x13a   :  { %v551_v39 = vpop.f32.mrf.mxu0  ;;  %v2090_v35 = vld [vmem:[#allocation8 + $0xc0] ss:$16 sps:$4 sm:$0xff]  }
 0x13b   :  { %v592_v40 = vpop.f32.mrf.mxu1  ;;  %v591_v41 = vadd.f32 %v590_v36, %v550_v38  ;;  %2180 = vtanh.f32 %v589_v37  ;;  %v2098_v36 = vld [vmem:[#allocation8 + $0xa4] ss:$16 sps:$4 sm:$0xff]   ;;  %v2096_v37 = vld [vmem:[#allocation8 + $0xa0] ss:$16 sps:$4 sm:$0xff]  }
 0x13c   :  { %v552_v42 = vpop.f32.mrf.mxu0  ;;  %v2104_v38 = vld [vmem:[#allocation8 + $0x84] ss:$16 sps:$4 sm:$0xff]   ;;  %v2102_v39 = vld [vmem:[#allocation8 + $0x80] ss:$16 sps:$4 sm:$0xff]  }
 0x13d   :  { %v593_v43 = vpop.f32.mrf.mxu1  ;;  %2182 = vtanh.f32 %v591_v41  ;;  %v2110_v40 = vld [vmem:[#allocation8 + $0x64] ss:$16 sps:$4 sm:$0xff]   ;;  %v2108_v41 = vld [vmem:[#allocation8 + $0x60] ss:$16 sps:$4 sm:$0xff]  }
 0x13e   :  { %v2116_v42 = vld [vmem:[#allocation8 + $0x44] ss:$16 sps:$4 sm:$0xff]   ;;  %v2114_v43 = vld [vmem:[#allocation8 + $0x40] ss:$16 sps:$4 sm:$0xff]  }
 0x148   :  { %v2181_v44 = vpop.eup %2180 }
 0x149   :  { %v597_v47 = vpack.c.bf16 %v2181_v44, %v2181_v44  ;;  %v2122_v44 = vld [vmem:[#allocation8 + $0x24] ss:$16 sps:$4 sm:$0xff]  }
 0x14a   :  { %v2183_v45 = vpop.eup %2182 }
 0x14b   :  { %v598_v46 = vpack.c.bf16 %v2183_v45, %v2183_v45  ;;  %v2120_v45 = vld [vmem:[#allocation8 + $0x20] ss:$16 sps:$4 sm:$0xff]  }
 0x14d   :  { %766 = vmatprep.mubr.bf16.mxu0 %v598_v46  ;;  %v2128_v46 = vld [vmem:[#allocation8 + $0x4] ss:$16 sps:$4 sm:$0xff]  }
 0x14e   :  { %767 = vmatmul.mubr.bf16.vlgmr.msra.gmra.mxu0 %v597_v47  ;;  %v2126_v47 = vld [vmem:[#allocation8] ss:$16 sps:$4 sm:$0xff]  }
 0x14f   :  { %1914 = vmatprep.mubr.msk.bf16.mxu0 %vm2321_vm0, %v2320_v23  ;;  %1907 = vmatpush3.bf16.msra.mxu0 %v2056_v63  ;;  %v2095_v63 = vld [vmem:[#allocation8 + $0xcc] ss:$16 sps:$4 sm:$0xff]  }
 0x150   :  { %1908 = vmatprep.subr.bf16.mxu0 %v2320_v23 }
 0x153   :  { %1909 = vmatpush3.bf16.msra.mxu0 %v2057_v0  ;;  %v2093_v0 = vld [vmem:[#allocation8 + $0xc8] ss:$16 sps:$4 sm:$0xff]  }
 0x154   :  { %1910 = vmatprep.subr.bf16.mxu0 %v2320_v23 }
 0x157   :  { %1911 = vmatpush3.bf16.msra.mxu0 %v2058_v1  ;;  %v2101_v1 = vld [vmem:[#allocation8 + $0xac] ss:$16 sps:$4 sm:$0xff]  }
 0x158   :  { %1912 = vmatprep.subr.bf16.mxu0 %v2320_v23  ;;  %v2080_v23 = vld [vmem:[#allocation7 + $0x14] ss:$8 sps:$4 sm:$0xff]  }
 0x15b   :  { %1913 = vmatpush3.bf16.msra.mxu0 %v2059_v2  ;;  %v2099_v2 = vld [vmem:[#allocation8 + $0xa8] ss:$16 sps:$4 sm:$0xff]  }
 0x15c   :  { %1533 = vmatprep.subr.bf16.mxu0 %v2086_v32  ;;  %v2162_v32 = vld [vmem:[#allocation8 + $0x140] ss:$16 sps:$4 sm:$0xff]  }
 0x20e   :  { %v1866_v54 = vpop.f32.mrf.mxu0 }
 0x210   :  { %v1867_v56 = vpop.f32.mrf.mxu0 }
 0x211   :  { %v1868_v57 = vadd.f32 %v1867_v56, %v1866_v54  ;;  %v1760_v54 = vld [vmem:[%s2507_s8] ss:$0 sm:$0xff] }
 0x212   :  { %v1869_v58 = vpop.f32.mrf.mxu0 }
 0x213   :  { %v769_v59 = vadd.f32 %v1868_v57, %v1734_v55 }
 0x214   :  { %v1870_v60 = vpop.f32.mrf.mxu0 }
 0x215   :  { %2184 = vtanh.f32 %v769_v59 }
 0x222   :  { %v2185_v61 = vpop.eup %2184 }
 0x223   :  { %v775_v62 = vpack.c.bf16 %v2185_v61, %v2185_v61  ;;  %v2087_v61 = vld [vmem:[#allocation8 + $0xe8] ss:$16 sps:$4 sm:$0xff]  }
 0x225   :  { %1903 = vmatmul.mubr.bf16.vlgmr.msra.gmra.mxu1 %v775_v62 }
 0x226   :  { %1083 = vmatpush1.bf16.msra.mxu1 %v2060_v3  ;;  %1114 = vmatprep.mubr.bf16.mxu1 %v2322_v30  ;;  %v2107_v3 = vld [vmem:[#allocation8 + $0x8c] ss:$16 sps:$4 sm:$0xff]   ;;  %v2164_v30 = vld [vmem:[#allocation8 + $0x144] ss:$16 sps:$4 sm:$0xff]  }
 0x227   :  { %1084 = vmatprep.subr.bf16.mxu1 %v2065_v5  ;;  %v2113_v5 = vld [vmem:[#allocation8 + $0x6c] ss:$16 sps:$4 sm:$0xff]  }
 0x22a   :  { %1085 = vmatpush1.bf16.msra.mxu1 %v2063_v6  ;;  %v2111_v6 = vld [vmem:[#allocation8 + $0x68] ss:$16 sps:$4 sm:$0xff]  }
 0x22b   :  { %1086 = vmatprep.subr.bf16.mxu1 %v2068_v7  ;;  %v2119_v7 = vld [vmem:[#allocation8 + $0x4c] ss:$16 sps:$4 sm:$0xff]  }
 0x22e   :  { %1087 = vmatpush1.bf16.msra.mxu1 %v2066_v8  ;;  %v2117_v8 = vld [vmem:[#allocation8 + $0x48] ss:$16 sps:$4 sm:$0xff]  }
 0x22f   :  { %1088 = vmatprep.subr.bf16.mxu1 %v2071_v9  ;;  %v2125_v9 = vld [vmem:[#allocation8 + $0x2c] ss:$16 sps:$4 sm:$0xff]  }
 0x232   :  { %1089 = vmatpush1.bf16.msra.mxu1 %v2069_v10  ;;  %v2123_v10 = vld [vmem:[#allocation8 + $0x28] ss:$16 sps:$4 sm:$0xff]  }
 0x233   :  { %1090 = vmatprep.subr.bf16.mxu1 %v2074_v19  ;;  %v2152_v19 = vld [vmem:[#allocation8 + $0x184] ss:$16 sps:$4 sm:$0xff]  }
 0x236   :  { %1091 = vmatpush1.bf16.msra.mxu1 %v2072_v20  ;;  %v2155_v20 = vld [vmem:[#allocation8 + $0x18c] ss:$16 sps:$4 sm:$0xff]  }
 0x237   :  { %1092 = vmatprep.subr.bf16.mxu1 %v2077_v21  ;;  %v2150_v21 = vld [vmem:[#allocation8 + $0x180] ss:$16 sps:$4 sm:$0xff]  }
 0x23a   :  { %1093 = vmatpush1.bf16.msra.mxu1 %v2075_v22  ;;  %v2153_v22 = vld [vmem:[#allocation8 + $0x188] ss:$16 sps:$4 sm:$0xff]  }
 0x23b   :  { %1094 = vmatprep.subr.bf16.mxu1 %v2080_v23  ;;  %v2158_v23 = vld [vmem:[#allocation8 + $0x164] ss:$16 sps:$4 sm:$0xff]  }
 0x23e   :  { %1095 = vmatpush1.bf16.msra.mxu1 %v2078_v24  ;;  %v2161_v24 = vld [vmem:[#allocation8 + $0x16c] ss:$16 sps:$4 sm:$0xff]  }
 0x23f   :  { %1096 = vmatprep.subr.bf16.mxu1 %v2083_v25  ;;  %v2156_v25 = vld [vmem:[#allocation8 + $0x160] ss:$16 sps:$4 sm:$0xff]  }
 0x242   :  { %1097 = vmatpush1.bf16.msra.mxu1 %v2081_v28  ;;  %v2159_v28 = vld [vmem:[#allocation8 + $0x168] ss:$16 sps:$4 sm:$0xff]  }
 0x243   :  { %1574 = vmatprep.subr.bf16.mxu1 %v2089_v33  ;;  %v2165_v33 = vld [vmem:[#allocation8 + $0x148] ss:$16 sps:$4 sm:$0xff]  }
 0x2e5   :  { %v881_v12 = vpop.f32.mrf.mxu1 }
 0x2e6   :  { %v882_v13 = vadd.f32 %v1751_v11, %v881_v12  ;;  %v2131_v11 = vld [vmem:[#allocation8 + $0xc] ss:$16 sps:$4 sm:$0xff]   ;;  %v2129_v12 = vld [vmem:[#allocation8 + $0x8] ss:$16 sps:$4 sm:$0xff]  }
 0x2e7   :  { %v1904_v14 = vpop.f32.mrf.mxu1 }
 0x2e8   :  { %2186 = vtanh.f32 %v882_v13  ;;  %v2137_v13 = vld [vmem:[#allocation8 + $0x1ec] ss:$16 sps:$4 sm:$0xff]   ;;  %v2135_v14 = vld [vmem:[#allocation8 + $0x1e8] ss:$16 sps:$4 sm:$0xff]  }
 0x2e9   :  { %v884_v15 = vpop.f32.mrf.mxu1 }
 0x2ea   :  { %v2143_v15 = vld [vmem:[#allocation8 + $0x1cc] ss:$16 sps:$4 sm:$0xff]  }
 0x2eb   :  { %v1905_v16 = vpop.f32.mrf.mxu1 }
 0x2ec   :  { %v2141_v16 = vld [vmem:[#allocation8 + $0x1c8] ss:$16 sps:$4 sm:$0xff]  }
 0x2f5   :  { %v2187_v17 = vpop.eup %2186 }
 0x2f6   :  { %v888_v18 = vpack.c.bf16 %v2187_v17, %v2187_v17  ;;  %v2149_v17 = vld [vmem:[#allocation8 + $0x1ac] ss:$16 sps:$4 sm:$0xff]  }
 0x2f8   :  { %1915 = vmatmul.mubr.msk.bf16.vlgmr.msra.gmra.mxu0 %vm928_vm1, %v888_v18  ;;  %v2147_v18 = vld [vmem:[#allocation8 + $0x1a8] ss:$16 sps:$4 sm:$0xff]  }
 0x2f9   :  { %1534 = vmatpush1.bf16.msra.mxu0 %v2084_v31  ;;  %v2167_v31 = vld [vmem:[#allocation8 + $0x14c] ss:$16 sps:$4 sm:$0xff]  }
 0x2fa   :  { %1535 = vmatprep.subr.bf16.mxu0 %v2092_v34  ;;  %v2170_v34 = vld [vmem:[#allocation8 + $0x124] ss:$16 sps:$4 sm:$0xff]  }
 0x2fd   :  { %1536 = vmatpush1.bf16.msra.mxu0 %v2090_v35  ;;  %v2173_v35 = vld [vmem:[#allocation8 + $0x12c] ss:$16 sps:$4 sm:$0xff]  }
 0x2fe   :  { %1537 = vmatprep.subr.bf16.mxu0 %v2098_v36  ;;  %v2168_v36 = vld [vmem:[#allocation8 + $0x120] ss:$16 sps:$4 sm:$0xff]  }
 0x301   :  { %1538 = vmatpush1.bf16.msra.mxu0 %v2096_v37  ;;  %v2171_v37 = vld [vmem:[#allocation8 + $0x128] ss:$16 sps:$4 sm:$0xff]  }
 0x302   :  { %1539 = vmatprep.subr.bf16.mxu0 %v2104_v38  ;;  %v2176_v38 = vld [vmem:[#allocation8 + $0x104] ss:$16 sps:$4 sm:$0xff]  }
 0x305   :  { %1540 = vmatpush1.bf16.msra.mxu0 %v2102_v39  ;;  %v2179_v39 = vld [vmem:[#allocation8 + $0x10c] ss:$16 sps:$4 sm:$0xff]  }
 0x306   :  { %1541 = vmatprep.subr.bf16.mxu0 %v2110_v40  ;;  %v2174_v40 = vld [vmem:[#allocation8 + $0x100] ss:$16 sps:$4 sm:$0xff]  }
 0x309   :  { %1542 = vmatpush1.bf16.msra.mxu0 %v2108_v41  ;;  %v2177_v41 = vld [vmem:[#allocation8 + $0x108] ss:$16 sps:$4 sm:$0xff]  }
 0x30a   :  { %1543 = vmatprep.subr.bf16.mxu0 %v2116_v42  ;;  %v990_v42 = vld [vmem:[%s2509_s10] sm:$0x3] }
 0x30d   :  { %1544 = vmatpush1.bf16.msra.mxu0 %v2114_v43  ;;  %v995_v43 = vrot.slane %v990_v42, %v2425_v27 }
 0x30e   :  { %1545 = vmatprep.subr.bf16.mxu0 %v2122_v44  ;;  %v999_v44 = vrot.slane %v990_v42, %v2431_v29 }
 0x311   :  { %1546 = vmatpush1.bf16.msra.mxu0 %v2120_v45 }
 0x312   :  { %1547 = vmatprep.subr.bf16.mxu0 %v2128_v46 }
 0x315   :  { %1548 = vmatpush1.bf16.msra.mxu0 %v2126_v47 }
 0x316   :  { %1549 = vmatprep.subr.bf16.mxu0 %v2134_v48 }
 0x319   :  { %1550 = vmatpush2.bf16.msra.mxu0 %v2132_v49 }
 0x31a   :  { %1551 = vmatprep.subr.bf16.mxu0 %v2140_v50 }
 0x31d   :  { %1552 = vmatpush2.bf16.msra.mxu0 %v2138_v51 }
 0x31e   :  { %1553 = vmatprep.subr.bf16.mxu0 %v2146_v52 }
 0x321   :  { %1554 = vmatpush2.bf16.msra.mxu0 %v2144_v53 }
 0x322   :  { %1555 = vmatprep.subr.bf16.mxu0 %v2152_v19 }
 0x325   :  { %1556 = vmatpush2.bf16.msra.mxu0 %v2150_v21 }
 0x326   :  { %1557 = vmatprep.subr.bf16.mxu0 %v2158_v23 }
 0x329   :  { %1558 = vmatpush2.bf16.msra.mxu0 %v2156_v25 }
 0x32a   :  { %1559 = vmatprep.subr.bf16.mxu0 %v2164_v30 }
 0x32d   :  { %1560 = vmatpush2.bf16.msra.mxu0 %v2162_v32 }
 0x32e   :  { %1561 = vmatprep.subr.bf16.mxu0 %v2170_v34 }
 0x331   :  { %1562 = vmatpush2.bf16.msra.mxu0 %v2168_v36 }
 0x332   :  { %1563 = vmatprep.subr.bf16.mxu0 %v2176_v38 }
 0x335   :  { %1564 = vmatpush2.bf16.msra.mxu0 %v2174_v40 }
 0x3b8   :  { %v966_v55 = vpop.f32.mrf.mxu0 }
 0x3b9   :  { %v967_v56 = vadd.f32 %v1760_v54, %v966_v55  ;;  %v1203_v55 = vsub.s32 2, %v2422_v26 }
 0x3ba   :  { %v1916_v57 = vpop.f32.mrf.mxu0 }
 0x3bb   :  { %2188 = vtanh.f32 %v967_v56  ;;  %v1191_v56 = vld [vmem:[%s2511_s12] sm:$0xf]  ;;  %v1207_v57 = vsub.s32 3, %v2422_v26  ;;  %s2323_s12 = smov [#allocation10]  }
 0x3bc   :  { %v969_v58 = vpop.f32.mrf.mxu0  ;;  %s1655_s22 = sshll.u32 %s2323_s12, 4  ;;  %s1656_s22 = int_to_ptr.vmem [resolvable:$true] %s1655_s22 }
 0x3bd   :  { %v1196_v58 = vrot.slane %v1191_v56, %v2425_v27  ;;  %s2282_s23 = scalar_lea.vmem %s1656_s22, 256  ;;  %p2287_p7 = scmp.lt.s32.totalorder %s1656_s22, %s1656_s22 }
 0x3be   :  { %v1917_v59 = vpop.f32.mrf.mxu0  ;;  %p2283_p6 = scmp.ne.s32.totalorder %s1656_s22, %s2282_s23  ;;  %p2288_p8 = scmp.lt.s32.totalorder %s2282_s23, %s2282_s23 }
 0x3bf   :  { %v1204_v59 = vrot.slane %v1191_v56, %v1203_v55 }
 0x3c0   :  { %p2289_p9 = por %p2288_p8, %p2287_p7 }
 0x3c2   :  { %p2290_p10 = pnand %p2289_p9, %p2283_p6 }
 0x3c8   :  { %v2189_v60 = vpop.eup %2188 }
 0x3c9   :  { %v973_v62 = vpack.c.bf16 %v2189_v60, %v2189_v60  ;;  %v1200_v60 = vrot.slane %v1191_v56, %v2431_v29 }
 0x3cb   :  { %1115 = vmatmul.mubr.bf16.vlgmr.msra.gmra.mxu1 %v973_v62 }
 0x3cc   :  { %1575 = vmatpush1.bf16.msra.mxu1 %v2087_v61  ;;  %v1208_v61 = vrot.slane %v1191_v56, %v1207_v57 }
 0x3cd   :  { %1576 = vmatprep.subr.bf16.mxu1 %v2095_v63 }
 0x3d0   :  { %1577 = vmatpush1.bf16.msra.mxu1 %v2093_v0 }
 0x3d1   :  { %1578 = vmatprep.subr.bf16.mxu1 %v2101_v1 }
 0x3d4   :  { %1579 = vmatpush1.bf16.msra.mxu1 %v2099_v2 }
 0x3d5   :  { %1580 = vmatprep.subr.bf16.mxu1 %v2107_v3 }
 0x3d8   :  { %1581 = vmatpush1.bf16.msra.mxu1 %v2105_v4 }
 0x3d9   :  { %1582 = vmatprep.subr.bf16.mxu1 %v2113_v5 }
 0x3dc   :  { %1583 = vmatpush1.bf16.msra.mxu1 %v2111_v6 }
 0x3dd   :  { %1584 = vmatprep.subr.bf16.mxu1 %v2119_v7 }
 0x3e0   :  { %1585 = vmatpush1.bf16.msra.mxu1 %v2117_v8 }
 0x3e1   :  { %1586 = vmatprep.subr.bf16.mxu1 %v2125_v9 }
 0x3e4   :  { %1587 = vmatpush1.bf16.msra.mxu1 %v2123_v10 }
 0x3e5   :  { %1588 = vmatprep.subr.bf16.mxu1 %v2131_v11 }
 0x3e8   :  { %1589 = vmatpush1.bf16.msra.mxu1 %v2129_v12 }
 0x3e9   :  { %1590 = vmatprep.subr.bf16.mxu1 %v2137_v13 }
 0x3ec   :  { %1591 = vmatpush2.bf16.msra.mxu1 %v2135_v14 }
 0x3ed   :  { %1592 = vmatprep.subr.bf16.mxu1 %v2143_v15 }
 0x3f0   :  { %1593 = vmatpush2.bf16.msra.mxu1 %v2141_v16 }
 0x3f1   :  { %1594 = vmatprep.subr.bf16.mxu1 %v2149_v17 }
 0x3f4   :  { %1595 = vmatpush2.bf16.msra.mxu1 %v2147_v18 }
 0x3f5   :  { %1596 = vmatprep.subr.bf16.mxu1 %v2155_v20 }
 0x3f8   :  { %1597 = vmatpush2.bf16.msra.mxu1 %v2153_v22 }
 0x3f9   :  { %1598 = vmatprep.subr.bf16.mxu1 %v2161_v24 }
 0x3fc   :  { %1599 = vmatpush2.bf16.msra.mxu1 %v2159_v28 }
 0x3fd   :  { %1600 = vmatprep.subr.bf16.mxu1 %v2167_v31 }
 0x400   :  { %1601 = vmatpush2.bf16.msra.mxu1 %v2165_v33 }
 0x401   :  { %1602 = vmatprep.subr.bf16.mxu1 %v2173_v35 }
 0x404   :  { %1603 = vmatpush2.bf16.msra.mxu1 %v2171_v37 }
 0x405   :  { %1604 = vmatprep.subr.bf16.mxu1 %v2179_v39 }
 0x408   :  { %1605 = vmatpush2.bf16.msra.mxu1 %v2177_v41 }
 0x48b   :  { %v1116_v45 = vpop.f32.mrf.mxu1 }
 0x48c   :  { %v1117_v46 = vadd.f32 %v1116_v45, %v995_v43 }
 0x48d   :  { %v1118_v47 = vpop.f32.mrf.mxu1 }
 0x48e   :  { %v1119_v48 = vadd.f32 %v1118_v47, %v999_v44  ;;  %2190 = vtanh.f32 %v1117_v46 }
 0x48f   :  { %v1120_v49 = vpop.f32.mrf.mxu1 }
 0x490   :  { %2192 = vtanh.f32 %v1119_v48 }
 0x491   :  { %v1121_v50 = vpop.f32.mrf.mxu1 }
 0x49b   :  { %v2191_v51 = vpop.eup %2190 }
 0x49c   :  { %v1125_v54 = vpack.c.bf16 %v2191_v51, %v2191_v51 }
 0x49d   :  { %v2193_v52 = vpop.eup %2192 }
 0x49e   :  { %v1126_v53 = vpack.c.bf16 %v2193_v52, %v2193_v52 }
 0x4a0   :  { %1565 = vmatprep.mubr.bf16.mxu0 %v1126_v53  ;;  %1606 = vmatprep.mubr.bf16.mxu1 %v1126_v53 }
 0x4a1   :  { %1566 = vmatmul.mubr.bf16.vlgmr.msra.gmra.mxu0 %v1125_v54  ;;  %1607 = vmatmul.mubr.bf16.vlgmr.msra.gmra.mxu1 %v1125_v54 }
 0x561   :  { %v1567_v62 = vpop.f32.mrf.mxu0  ;;  %v1608_v63 = vpop.f32.mrf.mxu1 }
 0x562   :  { %v1568_v0 = vadd.f32 %v1567_v62, %v1196_v58  ;;  %v1609_v1 = vadd.f32 %v1608_v63, %v1204_v59 }
 0x563   :  { %v1569_v2 = vpop.f32.mrf.mxu0  ;;  %v1610_v3 = vpop.f32.mrf.mxu1 }
 0x564   :  { %v1615_v4 = vmul.f32 0.5, %v1568_v0  ;;  %v1617_v5 = vmul.f32 0.5, %v1609_v1  ;;  %v1570_v6 = vadd.f32 %v1569_v2, %v1200_v60  ;;  %v1611_v7 = vadd.f32 %v1610_v3, %v1208_v61 }
 0x565   :  { %v1571_v8 = vpop.f32.mrf.mxu0  ;;  %v1612_v9 = vpop.f32.mrf.mxu1 }
 0x566   :  { %2194 = vtanh.f32 %v1615_v4  ;;  %v1616_v26 = vmul.f32 0.5, %v1570_v6  ;;  %v1618_v10 = vmul.f32 0.5, %v1611_v7 }
 0x567   :  { %2196 = vtanh.f32 %v1617_v5  ;;  %v1572_v27 = vpop.f32.mrf.mxu0  ;;  %v1613_v11 = vpop.f32.mrf.mxu1 }
 0x568   :  { %2198 = vtanh.f32 %v1616_v26 }
 0x569   :  { %2200 = vtanh.f32 %v1618_v10 }
 0x573   :  { %v2195_v29 = vpop.eup %2194 }
 0x574   :  { %v2197_v12 = vpop.eup %2196  ;;  %v1623_v13 = vmul.f32 0.5, %v2195_v29 }
 0x575   :  { %v2199_v14 = vpop.eup %2198  ;;  %v1625_v15 = vmul.f32 0.5, %v2197_v12 }
 0x576   :  { %v2201_v16 = vpop.eup %2200  ;;  %v1624_v17 = vmul.f32 0.5, %v2199_v14  ;;  %v1627_v19 = vadd.f32 0.5, %v1623_v13 }
 0x577   :  { %v1626_v18 = vmul.f32 0.5, %v2201_v16  ;;  %v1629_v21 = vadd.f32 0.5, %v1625_v15 }
 0x578   :  { %v1628_v20 = vadd.f32 0.5, %v1624_v17 }
 0x579   :  { %v1630_v22 = vadd.f32 0.5, %v1626_v18 }
 0x57a   :  { %v1848_v23 = vpack.c.bf16 %v1628_v20, %v1627_v19 }
 0x57b   :  { %v1849_v24 = vpack.c.bf16 %v1630_v22, %v1629_v21 }
 0x57c   :  { %1647 = vst [vmem:[#allocation10] sm:$0xff] %v1848_v23 }
 0x57d   :  { %1648 = vst [vmem:[#allocation10 + $0x8] sm:$0xff] %v1849_v24 }
 0x57e   :  { %2293 = shalt.err (!%p2290_p10)
}
 0x57f   :  { %1658 = dma.vmem_to_hbm [thread:$0]  %s1656_s22, 256, %s2512_s13, [#allocation4]  }
 0x580   :  { %2308 = dma.done.wait [#allocation4], 256  }
 0x581   :  { %2309 = vsyncadd [#allocation4], 4294967040 }
 0x582   :  { %1662 = vsyncpa [#allocation3], 1 }
 0x583   :  { %1663 = vsyncpa [#allocation6], 1 }
 0x584   :  { %1664 = vsyncpa [#allocation9], 1 }
 0x585   :  { %1665 = vsyncpa [#allocation4], 1 }

</bundles_post_ra>
